<compile_context>
chip_gen: v7x
topology: tpu7x:2x2x1
jax: 0.10.0
libtpu: 0.0.40
codegen_flags: <defaults>
</compile_context>

<pallas_src>
import functools

import jax
import jax.numpy as jnp
from jax.experimental import pallas as pl
from jax.experimental.pallas import tpu as pltpu  # noqa: F401  (TPU backend)

LANE = 128
SUBLANE = 8


def _round_up(v, m):
    return ((v + m - 1) // m) * m


# ----------------------------------------------------------------------------
# In-kernel building block: RGCNConv (mean aggr) + GraphNorm(batch=None) + ReLU
# operating on VMEM-resident values.
#   vec rows: 0 = conv bias, 1 = GraphNorm weight, 2 = GraphNorm bias, 3 = mean_scale.
# ----------------------------------------------------------------------------
def _rgcn_graphnorm_relu(a2d, x, w_rel, w_root, vec, n_real, mask):
    n_pad = x.shape[0]
    num_rel = a2d.shape[0] // n_pad

    bias = vec[0:1, :]
    gn_w = vec[1:2, :]
    gn_b = vec[2:3, :]
    gn_ms = vec[3:4, :]

    # One MXU call aggregates all relations:
    #   a2d[r*n + dst, src] = 1/deg_r(dst)  =>  agg[r*n + dst] = mean_{src in N_r(dst)} x[src]
    agg = jnp.dot(a2d, x, preferred_element_type=jnp.float32)             # [R*Np, F]

    # Relation blocks side-by-side on the lane axis -> [Np, R*F]; F is a multiple of 128
    # so this is pure lane placement, and the relation transform collapses into ONE
    # wide-K dot against w_rel of shape [R*F, Fout].
    agg_cat = jnp.concatenate(
        [agg[i * n_pad:(i + 1) * n_pad, :] for i in range(num_rel)], axis=1)

    acc = (jnp.dot(x, w_root, preferred_element_type=jnp.float32)
           + jnp.dot(agg_cat, w_rel, preferred_element_type=jnp.float32)
           + bias)                                                         # [Np, Fout]
    if mask is not None:
        acc = acc * mask                                                   # zero padded node rows

    # GraphNorm with batch=None -> statistics over the n_real real nodes, per feature column.
    inv_n = 1.0 / n_real
    mean = jnp.sum(acc, axis=0, keepdims=True) * inv_n
    centered = acc - gn_ms * mean
    if mask is not None:
        centered = centered * mask
    var = jnp.sum(centered * centered, axis=0, keepdims=True) * inv_n
    normed = gn_w * centered * jax.lax.rsqrt(var + 1e-5) + gn_b

    return jnp.maximum(normed, 0.0)                                        # ReLU


# ----------------------------------------------------------------------------
# Single fused kernel: conv1+GN1+ReLU -> conv2+GN2+ReLU -> mean-pool -> Linear
# ----------------------------------------------------------------------------
def fused_mnist_rgcn_kernel(a2d_ref, x_ref,
                            w_rel1_ref, w_root1_ref, vec1_ref,
                            w_rel2_ref, w_root2_ref, vec2_ref,
                            pool_ref, lin_w_ref, lin_b_ref,
                            out_ref, *, n_real):
    n_pad = x_ref.shape[0]
    a2d = a2d_ref[...]                                                     # [R*Np, Np]

    if n_pad != n_real:
        rows = jax.lax.broadcasted_iota(jnp.int32, (n_pad, 1), 0)
        mask = (rows < n_real).astype(jnp.float32)
    else:
        mask = None

    h = _rgcn_graphnorm_relu(a2d, x_ref[...], w_rel1_ref[...], w_root1_ref[...],
                             vec1_ref[...], n_real, mask)
    h = _rgcn_graphnorm_relu(a2d, h, w_rel2_ref[...], w_root2_ref[...],
                             vec2_ref[...], n_real, mask)

    # global_mean_pool as a pooling matmul on the VMEM-resident h, then the final Linear.
    # TODO(synk): F.dropout is eval-mode identity (no stochastic masking).
    pooled = jnp.dot(pool_ref[...], h, preferred_element_type=jnp.float32)      # [Gp, F2]
    out_ref[...] = (jnp.dot(pooled, lin_w_ref[...], preferred_element_type=jnp.float32)
                    + lin_b_ref[...])                                            # [Gp, Cp]


# ----------------------------------------------------------------------------
# Full model forward (layout plumbing in jitted JAX, hot path in the fused kernel)
# ----------------------------------------------------------------------------
@functools.partial(jax.jit, static_argnames=("num_relations", "num_graphs"))
def mnist_rgcn_forward(x, edge_index, edge_type, batch, params, num_relations, num_graphs):
    n, f_in = x.shape
    n_pad = _round_up(max(n, SUBLANE), SUBLANE)
    src, dst = edge_index[0], edge_index[1]

    # Dense, row-normalized adjacency per relation (== scatter-mean over incoming edges,
    # duplicates counted, 0 for deg-0 rows), flattened to [R*Np, Np] for the fused matmul.
    adj = jnp.zeros((num_relations, n_pad, n_pad), jnp.float32).at[edge_type, dst, src].add(1.0)
    deg = jnp.sum(adj, axis=2, keepdims=True)
    adj = adj / jnp.maximum(deg, 1.0)
    a2d = adj.reshape(num_relations * n_pad, n_pad)

    # global_mean_pool as a pooling matrix, rows padded to a full sublane group.
    g_pad = _round_up(max(num_graphs, SUBLANE), SUBLANE)
    onehot = (batch[None, :] == jnp.arange(num_graphs)[:, None]).astype(jnp.float32)  # [G, N]
    counts = jnp.sum(onehot, axis=1, keepdims=True)
    pool_mat = onehot / jnp.maximum(counts, 1.0)
    pool_mat = jnp.pad(pool_mat, ((0, g_pad - num_graphs), (0, n_pad - n)))

    # Lane-pad every feature dim to a multiple of 128. Padded columns stay exactly zero
    # through conv / GraphNorm / ReLU (stats are per-column), so results are unchanged.
    hid1 = params["conv1_w_root"].shape[1]
    hid2 = params["conv2_w_root"].shape[1]
    n_cls = params["lin_w"].shape[1]
    f0, f1, f2, cp = (_round_up(d, LANE) for d in (f_in, hid1, hid2, n_cls))

    def pad2(a, rows, cols):
        return jnp.pad(a, ((0, rows - a.shape[0]), (0, cols - a.shape[1])))

    def pack_vecs(names, width):
        v = jnp.concatenate([pad2(params[k], 1, width) for k in names], axis=0)
        return jnp.pad(v, ((0, SUBLANE - v.shape[0]), (0, 0)))

    x_p = pad2(x, n_pad, f0)

    w_rel1 = jnp.pad(params["conv1_w_rel"],
                     ((0, 0), (0, f0 - f_in), (0, f1 - hid1))
                     ).reshape(num_relations * f0, f1)
    w_root1 = pad2(params["conv1_w_root"], f0, f1)
    vec1 = pack_vecs(("conv1_bias", "gn1_w", "gn1_b", "gn1_ms"), f1)

    w_rel2 = jnp.pad(params["conv2_w_rel"],
                     ((0, 0), (0, f1 - hid1), (0, f2 - hid2))
                     ).reshape(num_relations * f1, f2)
    w_root2 = pad2(params["conv2_w_root"], f1, f2)
    vec2 = pack_vecs(("conv2_bias", "gn2_w", "gn2_b", "gn2_ms"), f2)

    lin_w = pad2(params["lin_w"], f2, cp)
    lin_b = pad2(params["lin_b"], 1, cp)

    kernel = functools.partial(fused_mnist_rgcn_kernel, n_real=n)
    out_padded = pl.pallas_call(
        kernel,
        out_shape=jax.ShapeDtypeStruct((g_pad, cp), jnp.float32),
    )(a2d, x_p,
      w_rel1, w_root1, vec1,
      w_rel2, w_root2, vec2,
      pool_mat, lin_w, lin_b)

    return out_padded[:num_graphs, :n_cls]


def init_params(key, num_features, hidden, num_classes, num_relations):
    h2 = hidden * 2
    ks = jax.random.split(key, 8)
    scale = 0.1
    params = {
        "conv1_w_rel":  scale * jax.random.normal(ks[0], (num_relations, num_features, hidden), jnp.float32),
        "conv1_w_root": scale * jax.random.normal(ks[1], (num_features, hidden), jnp.float32),
        "conv1_bias":   jnp.zeros((1, hidden), jnp.float32),
        "gn1_w":        jnp.ones((1, hidden), jnp.float32),
        "gn1_b":        jnp.zeros((1, hidden), jnp.float32),
        "gn1_ms":       jnp.ones((1, hidden), jnp.float32),
        "conv2_w_rel":  scale * jax.random.normal(ks[2], (num_relations, hidden, h2), jnp.float32),
        "conv2_w_root": scale * jax.random.normal(ks[3], (hidden, h2), jnp.float32),
        "conv2_bias":   jnp.zeros((1, h2), jnp.float32),
        "gn2_w":        jnp.ones((1, h2), jnp.float32),
        "gn2_b":        jnp.zeros((1, h2), jnp.float32),
        "gn2_ms":       jnp.ones((1, h2), jnp.float32),
        "lin_w":        scale * jax.random.normal(ks[4], (h2, num_classes), jnp.float32),  # [in, out]
        "lin_b":        jnp.zeros((1, num_classes), jnp.float32),
    }
    return params


if __name__ == "__main__":
    # small shapes consistent with the module
    NUM_FEATURES = 4
    HIDDEN = 32
    NUM_CLASSES = 10
    NUM_RELATIONS = 4
    N_NODES = 64
    N_EDGES = 256
    NUM_GRAPHS = 2

    key = jax.random.PRNGKey(0)
    k_x, k_src, k_dst, k_et, k_p = jax.random.split(key, 5)

    x = jax.random.normal(k_x, (N_NODES, NUM_FEATURES), jnp.float32)
    src = jax.random.randint(k_src, (N_EDGES,), 0, N_NODES)
    dst = jax.random.randint(k_dst, (N_EDGES,), 0, N_NODES)
    edge_index = jnp.stack([src, dst], axis=0)                          # [2, E]
    edge_type = jax.random.randint(k_et, (N_EDGES,), 0, NUM_RELATIONS)
    batch = jnp.repeat(jnp.arange(NUM_GRAPHS), N_NODES // NUM_GRAPHS)   # [N]

    params = init_params(k_p, NUM_FEATURES, HIDDEN, NUM_CLASSES, NUM_RELATIONS)

    out = mnist_rgcn_forward(x, edge_index, edge_type, batch, params,
                             NUM_RELATIONS, NUM_GRAPHS)
    out = jax.block_until_ready(out)
    assert out.shape == (NUM_GRAPHS, NUM_CLASSES)
    print("KERNEL_OK")
</pallas_src>

<mosaic_0001>
module attributes {stable_mosaic.version = 11 : i64} {
  func.func private @main(%arg0: i32) attributes {dimension_semantics = [#tpu.dimension_semantics<core_parallel>], iteration_bounds = array<i64: 2>, tpu.core_type = #tpu.core_type<sc_scalar_subcore>, window_params = []} {
    return
  }
}

module attributes {stable_mosaic.version = 11 : i64} {
  func.func private @main(%arg0: i32) attributes {dimension_semantics = [#tpu.dimension_semantics<core_parallel>], iteration_bounds = array<i64: 2>, tpu.core_type = #tpu.core_type<sc_scalar_subcore>, window_params = []} {
    return
  }
}

module attributes {stable_mosaic.version = 11 : i64} {
  func.func @fused_mnist_rgcn_kernel(%arg0: memref<256x64xf32, #tpu.memory_space<vmem>>, %arg1: memref<64x128xf32, #tpu.memory_space<vmem>>, %arg2: memref<512x128xf32, #tpu.memory_space<vmem>>, %arg3: memref<128x128xf32, #tpu.memory_space<vmem>>, %arg4: memref<8x128xf32, #tpu.memory_space<vmem>>, %arg5: memref<512x128xf32, #tpu.memory_space<vmem>>, %arg6: memref<128x128xf32, #tpu.memory_space<vmem>>, %arg7: memref<8x128xf32, #tpu.memory_space<vmem>>, %arg8: memref<8x64xf32, #tpu.memory_space<vmem>>, %arg9: memref<128x128xf32, #tpu.memory_space<vmem>>, %arg10: memref<1x128xf32, #tpu.memory_space<vmem>>, %arg11: memref<8x128xf32, #tpu.memory_space<vmem>>) attributes {dimension_semantics = [], scalar_prefetch = 0 : i64, scratch_operands = 0 : i64, tpu.core_type = #tpu.core_type<tc>} {
    %c0 = arith.constant 0 : index
    %c0_0 = arith.constant 0 : index
    %0 = vector.load %arg0[%c0, %c0_0] : memref<256x64xf32, #tpu.memory_space<vmem>>, vector<256x64xf32>
    %c0_1 = arith.constant 0 : index
    %c0_2 = arith.constant 0 : index
    %1 = vector.load %arg1[%c0_1, %c0_2] : memref<64x128xf32, #tpu.memory_space<vmem>>, vector<64x128xf32>
    %c0_3 = arith.constant 0 : index
    %c0_4 = arith.constant 0 : index
    %2 = vector.load %arg2[%c0_3, %c0_4] : memref<512x128xf32, #tpu.memory_space<vmem>>, vector<512x128xf32>
    %c0_5 = arith.constant 0 : index
    %c0_6 = arith.constant 0 : index
    %3 = vector.load %arg3[%c0_5, %c0_6] : memref<128x128xf32, #tpu.memory_space<vmem>>, vector<128x128xf32>
    %c0_7 = arith.constant 0 : index
    %c0_8 = arith.constant 0 : index
    %4 = vector.load %arg4[%c0_7, %c0_8] : memref<8x128xf32, #tpu.memory_space<vmem>>, vector<8x128xf32>
    %5 = vector.extract_strided_slice %4 {offsets = [0, 0], sizes = [1, 128], strides = [1, 1]} : vector<8x128xf32> to vector<1x128xf32>
    %6 = vector.extract_strided_slice %4 {offsets = [1, 0], sizes = [1, 128], strides = [1, 1]} : vector<8x128xf32> to vector<1x128xf32>
    %7 = vector.extract_strided_slice %4 {offsets = [2, 0], sizes = [1, 128], strides = [1, 1]} : vector<8x128xf32> to vector<1x128xf32>
    %8 = vector.extract_strided_slice %4 {offsets = [3, 0], sizes = [1, 128], strides = [1, 1]} : vector<8x128xf32> to vector<1x128xf32>
    %cst = arith.constant dense<0.000000e+00> : vector<256x128xf32>
    %9 = tpu.matmul %0, %1, %cst {dimension_numbers = #tpu.dot_dimension_numbers<[1], [0], [0], [1], [0, 0, 1, 1], [], []>} : vector<256x64xf32>, vector<64x128xf32>, vector<256x128xf32> -> vector<256x128xf32>
    %10 = vector.extract_strided_slice %9 {offsets = [0, 0], sizes = [64, 128], strides = [1, 1]} : vector<256x128xf32> to vector<64x128xf32>
    %11 = vector.extract_strided_slice %9 {offsets = [64, 0], sizes = [64, 128], strides = [1, 1]} : vector<256x128xf32> to vector<64x128xf32>
    %12 = vector.extract_strided_slice %9 {offsets = [128, 0], sizes = [64, 128], strides = [1, 1]} : vector<256x128xf32> to vector<64x128xf32>
    %13 = vector.extract_strided_slice %9 {offsets = [192, 0], sizes = [64, 128], strides = [1, 1]} : vector<256x128xf32> to vector<64x128xf32>
    %14 = tpu.concatenate %10, %11, %12, %13 in 1 : vector<64x128xf32>, vector<64x128xf32>, vector<64x128xf32>, vector<64x128xf32> -> vector<64x512xf32>
    %cst_9 = arith.constant dense<0.000000e+00> : vector<64x128xf32>
    %15 = tpu.matmul %1, %3, %cst_9 {dimension_numbers = #tpu.dot_dimension_numbers<[1], [0], [0], [1], [0, 0, 1, 1], [], []>} : vector<64x128xf32>, vector<128x128xf32>, vector<64x128xf32> -> vector<64x128xf32>
    %cst_10 = arith.constant dense<0.000000e+00> : vector<64x128xf32>
    %16 = tpu.matmul %14, %2, %cst_10 {dimension_numbers = #tpu.dot_dimension_numbers<[1], [0], [0], [1], [0, 0, 1, 1], [], []>} : vector<64x512xf32>, vector<512x128xf32>, vector<64x128xf32> -> vector<64x128xf32>
    %17 = arith.addf %15, %16 : vector<64x128xf32>
    %18 = vector.broadcast %5 : vector<1x128xf32> to vector<64x128xf32>
    %19 = arith.addf %17, %18 : vector<64x128xf32>
    %cst_11 = arith.constant dense<0.000000e+00> : vector<128xf32>
    %20 = vector.multi_reduction <add>, %19, %cst_11 [0] : vector<64x128xf32> to vector<128xf32>
    %21 = vector.shape_cast %20 : vector<128xf32> to vector<1x128xf32>
    %cst_12 = arith.constant 1.562500e-02 : f32
    %22 = vector.broadcast %cst_12 : f32 to vector<1x128xf32>
    %23 = arith.mulf %21, %22 : vector<1x128xf32>
    %24 = arith.mulf %8, %23 : vector<1x128xf32>
    %25 = vector.broadcast %24 : vector<1x128xf32> to vector<64x128xf32>
    %26 = arith.subf %19, %25 : vector<64x128xf32>
    %27 = arith.mulf %26, %26 : vector<64x128xf32>
    %cst_13 = arith.constant dense<0.000000e+00> : vector<128xf32>
    %28 = vector.multi_reduction <add>, %27, %cst_13 [0] : vector<64x128xf32> to vector<128xf32>
    %29 = vector.shape_cast %28 : vector<128xf32> to vector<1x128xf32>
    %cst_14 = arith.constant 1.562500e-02 : f32
    %30 = vector.broadcast %cst_14 : f32 to vector<1x128xf32>
    %31 = arith.mulf %29, %30 : vector<1x128xf32>
    %32 = vector.broadcast %6 : vector<1x128xf32> to vector<64x128xf32>
    %33 = arith.mulf %32, %26 : vector<64x128xf32>
    %cst_15 = arith.constant 9.99999974E-6 : f32
    %34 = vector.broadcast %cst_15 : f32 to vector<1x128xf32>
    %35 = arith.addf %31, %34 : vector<1x128xf32>
    %36 = math.rsqrt %35 : vector<1x128xf32>
    %37 = vector.broadcast %36 : vector<1x128xf32> to vector<64x128xf32>
    %38 = arith.mulf %33, %37 : vector<64x128xf32>
    %39 = vector.broadcast %7 : vector<1x128xf32> to vector<64x128xf32>
    %40 = arith.addf %38, %39 : vector<64x128xf32>
    %cst_16 = arith.constant 0.000000e+00 : f32
    %41 = vector.broadcast %cst_16 : f32 to vector<64x128xf32>
    %42 = arith.maximumf %40, %41 : vector<64x128xf32>
    %c0_17 = arith.constant 0 : index
    %c0_18 = arith.constant 0 : index
    %43 = vector.load %arg5[%c0_17, %c0_18] : memref<512x128xf32, #tpu.memory_space<vmem>>, vector<512x128xf32>
    %c0_19 = arith.constant 0 : index
    %c0_20 = arith.constant 0 : index
    %44 = vector.load %arg6[%c0_19, %c0_20] : memref<128x128xf32, #tpu.memory_space<vmem>>, vector<128x128xf32>
    %c0_21 = arith.constant 0 : index
    %c0_22 = arith.constant 0 : index
    %45 = vector.load %arg7[%c0_21, %c0_22] : memref<8x128xf32, #tpu.memory_space<vmem>>, vector<8x128xf32>
    %46 = vector.extract_strided_slice %45 {offsets = [0, 0], sizes = [1, 128], strides = [1, 1]} : vector<8x128xf32> to vector<1x128xf32>
    %47 = vector.extract_strided_slice %45 {offsets = [1, 0], sizes = [1, 128], strides = [1, 1]} : vector<8x128xf32> to vector<1x128xf32>
    %48 = vector.extract_strided_slice %45 {offsets = [2, 0], sizes = [1, 128], strides = [1, 1]} : vector<8x128xf32> to vector<1x128xf32>
    %49 = vector.extract_strided_slice %45 {offsets = [3, 0], sizes = [1, 128], strides = [1, 1]} : vector<8x128xf32> to vector<1x128xf32>
    %cst_23 = arith.constant dense<0.000000e+00> : vector<256x128xf32>
    %50 = tpu.matmul %0, %42, %cst_23 {dimension_numbers = #tpu.dot_dimension_numbers<[1], [0], [0], [1], [0, 0, 1, 1], [], []>} : vector<256x64xf32>, vector<64x128xf32>, vector<256x128xf32> -> vector<256x128xf32>
    %51 = vector.extract_strided_slice %50 {offsets = [0, 0], sizes = [64, 128], strides = [1, 1]} : vector<256x128xf32> to vector<64x128xf32>
    %52 = vector.extract_strided_slice %50 {offsets = [64, 0], sizes = [64, 128], strides = [1, 1]} : vector<256x128xf32> to vector<64x128xf32>
    %53 = vector.extract_strided_slice %50 {offsets = [128, 0], sizes = [64, 128], strides = [1, 1]} : vector<256x128xf32> to vector<64x128xf32>
    %54 = vector.extract_strided_slice %50 {offsets = [192, 0], sizes = [64, 128], strides = [1, 1]} : vector<256x128xf32> to vector<64x128xf32>
    %55 = tpu.concatenate %51, %52, %53, %54 in 1 : vector<64x128xf32>, vector<64x128xf32>, vector<64x128xf32>, vector<64x128xf32> -> vector<64x512xf32>
    %cst_24 = arith.constant dense<0.000000e+00> : vector<64x128xf32>
    %56 = tpu.matmul %42, %44, %cst_24 {dimension_numbers = #tpu.dot_dimension_numbers<[1], [0], [0], [1], [0, 0, 1, 1], [], []>} : vector<64x128xf32>, vector<128x128xf32>, vector<64x128xf32> -> vector<64x128xf32>
    %cst_25 = arith.constant dense<0.000000e+00> : vector<64x128xf32>
    %57 = tpu.matmul %55, %43, %cst_25 {dimension_numbers = #tpu.dot_dimension_numbers<[1], [0], [0], [1], [0, 0, 1, 1], [], []>} : vector<64x512xf32>, vector<512x128xf32>, vector<64x128xf32> -> vector<64x128xf32>
    %58 = arith.addf %56, %57 : vector<64x128xf32>
    %59 = vector.broadcast %46 : vector<1x128xf32> to vector<64x128xf32>
    %60 = arith.addf %58, %59 : vector<64x128xf32>
    %cst_26 = arith.constant dense<0.000000e+00> : vector<128xf32>
    %61 = vector.multi_reduction <add>, %60, %cst_26 [0] : vector<64x128xf32> to vector<128xf32>
    %62 = vector.shape_cast %61 : vector<128xf32> to vector<1x128xf32>
    %cst_27 = arith.constant 1.562500e-02 : f32
    %63 = vector.broadcast %cst_27 : f32 to vector<1x128xf32>
    %64 = arith.mulf %62, %63 : vector<1x128xf32>
    %65 = arith.mulf %49, %64 : vector<1x128xf32>
    %66 = vector.broadcast %65 : vector<1x128xf32> to vector<64x128xf32>
    %67 = arith.subf %60, %66 : vector<64x128xf32>
    %68 = arith.mulf %67, %67 : vector<64x128xf32>
    %cst_28 = arith.constant dense<0.000000e+00> : vector<128xf32>
    %69 = vector.multi_reduction <add>, %68, %cst_28 [0] : vector<64x128xf32> to vector<128xf32>
    %70 = vector.shape_cast %69 : vector<128xf32> to vector<1x128xf32>
    %cst_29 = arith.constant 1.562500e-02 : f32
    %71 = vector.broadcast %cst_29 : f32 to vector<1x128xf32>
    %72 = arith.mulf %70, %71 : vector<1x128xf32>
    %73 = vector.broadcast %47 : vector<1x128xf32> to vector<64x128xf32>
    %74 = arith.mulf %73, %67 : vector<64x128xf32>
    %cst_30 = arith.constant 9.99999974E-6 : f32
    %75 = vector.broadcast %cst_30 : f32 to vector<1x128xf32>
    %76 = arith.addf %72, %75 : vector<1x128xf32>
    %77 = math.rsqrt %76 : vector<1x128xf32>
    %78 = vector.broadcast %77 : vector<1x128xf32> to vector<64x128xf32>
    %79 = arith.mulf %74, %78 : vector<64x128xf32>
    %80 = vector.broadcast %48 : vector<1x128xf32> to vector<64x128xf32>
    %81 = arith.addf %79, %80 : vector<64x128xf32>
    %cst_31 = arith.constant 0.000000e+00 : f32
    %82 = vector.broadcast %cst_31 : f32 to vector<64x128xf32>
    %83 = arith.maximumf %81, %82 : vector<64x128xf32>
    %c0_32 = arith.constant 0 : index
    %c0_33 = arith.constant 0 : index
    %84 = vector.load %arg8[%c0_32, %c0_33] : memref<8x64xf32, #tpu.memory_space<vmem>>, vector<8x64xf32>
    %cst_34 = arith.constant dense<0.000000e+00> : vector<8x128xf32>
    %85 = tpu.matmul %84, %83, %cst_34 {dimension_numbers = #tpu.dot_dimension_numbers<[1], [0], [0], [1], [0, 0, 1, 1], [], []>} : vector<8x64xf32>, vector<64x128xf32>, vector<8x128xf32> -> vector<8x128xf32>
    %c0_35 = arith.constant 0 : index
    %c0_36 = arith.constant 0 : index
    %86 = vector.load %arg9[%c0_35, %c0_36] : memref<128x128xf32, #tpu.memory_space<vmem>>, vector<128x128xf32>
    %cst_37 = arith.constant dense<0.000000e+00> : vector<8x128xf32>
    %87 = tpu.matmul %85, %86, %cst_37 {dimension_numbers = #tpu.dot_dimension_numbers<[1], [0], [0], [1], [0, 0, 1, 1], [], []>} : vector<8x128xf32>, vector<128x128xf32>, vector<8x128xf32> -> vector<8x128xf32>
    %c0_38 = arith.constant 0 : index
    %c0_39 = arith.constant 0 : index
    %88 = vector.load %arg10[%c0_38, %c0_39] : memref<1x128xf32, #tpu.memory_space<vmem>>, vector<1x128xf32>
    %89 = vector.broadcast %88 : vector<1x128xf32> to vector<8x128xf32>
    %90 = arith.addf %87, %89 : vector<8x128xf32>
    %c0_40 = arith.constant 0 : index
    %c0_41 = arith.constant 0 : index
    %91 = vector.load %arg11[%c0_40, %c0_41] : memref<8x128xf32, #tpu.memory_space<vmem>>, vector<8x128xf32>
    tpu.vector_store %arg11[%c0_40, %c0_41], %90 {strides = array<i32>} : memref<8x128xf32, #tpu.memory_space<vmem>>, vector<8x128xf32>,
    return
  }
}

</mosaic_0001>

<bundles_post_ra>
// kernel: mnist_rgcn_forward.1
= control target key start
LH: loop header
LB: loop body
LE: loop exit
PB: predicated region body
PF: predicated region fallthrough
CT: control target
= control target key end

     0   :  { %vm159_vm0 = vcmask 523264   ;;  %vm2801_vm1 = vmmov 0   ;;  %s4009_s1 = inlined_call_operand.vmem [shape: f32[64,128], index: 1, kind: input, shape index: {}]   ;;  %s4010_s0 = inlined_call_operand.vmem [shape: f32[256,64], index: 0, kind: input, shape index: {}]   ;;  %s4011_s2 = inlined_call_operand.vmem [shape: f32[512,128], index: 2, kind: input, shape index: {}]   ;;  %s4012_s3 = inlined_call_operand.vmem [shape: f32[128,128], index: 3, kind: input, shape index: {}]   ;;  %s4013_s4 = inlined_call_operand.vmem [shape: f32[8,128], index: 4, kind: input, shape index: {}]   ;;  %s4014_s5 = inlined_call_operand.vmem [shape: f32[512,128], index: 5, kind: input, shape index: {}]   ;;  %s4015_s6 = inlined_call_operand.vmem [shape: f32[128,128], index: 6, kind: input, shape index: {}]   ;;  %s4016_s9 = inlined_call_operand.vmem [shape: f32[128,128], index: 9, kind: input, shape index: {}]   ;;  %s4017_s7 = inlined_call_operand.vmem [shape: f32[8,128], index: 7, kind: input, shape index: {}]   ;;  %s4018_s8 = inlined_call_operand.vmem [shape: f32[8,64], index: 8, kind: input, shape index: {}]   ;;  %s4019_s10 = inlined_call_operand.vmem [shape: f32[1,128], index: 10, kind: input, shape index: {}]   ;;  %s4020_s11 = inlined_call_operand.vmem [shape: f32[8,128], index: 11, kind: output, shape index: {}]  }
   0x1   :  { %v2866_v0 = vld [vmem:[%s4009_s1] sm:$0xff]  ;;  %v2871_v1 = vld [vmem:[%s4009_s1 + $0x8] sm:$0xff]  ;;  %v2876_v2 = vld [vmem:[%s4009_s1 + $0x10] sm:$0xff] }
   0x2   :  { %v2509_v3 = vpack.c.bf16 %v2871_v1, %v2866_v0  ;;  %v2883_v4 = vld [vmem:[%s4009_s1 + $0x18] sm:$0xff]  ;;  %v2890_v6 = vld [vmem:[%s4009_s1 + $0x20] sm:$0xff]  ;;  %v2895_v7 = vld [vmem:[%s4009_s1 + $0x28] sm:$0xff] }
   0x3   :  { %v2513_v5 = vpack.c.bf16 %v2883_v4, %v2876_v2  ;;  %v2900_v8 = vld [vmem:[%s4010_s0] sm:$0xff]  ;;  %v2517_v9 = vpack.c.bf16 %v2895_v7, %v2890_v6  ;;  %v2909_v10 = vld [vmem:[%s4009_s1 + $0x30] sm:$0xff]  ;;  %v2914_v11 = vld [vmem:[%s4009_s1 + $0x38] sm:$0xff] }
   0x4   :  { %2510 = vmatprep.subr.bf16.mxu0 %v2509_v3  ;;  %2255 = vmatprep.mubr.msk.f32.mxu0 %vm159_vm0, %v2900_v8  ;;  %v54_v12 = vld [vmem:[%s4010_s0 + $0x80] sm:$0xff]  ;;  %v2521_v13 = vpack.c.bf16 %v2914_v11, %v2909_v10  ;;  %v95_v15 = vld [vmem:[%s4011_s2 + $0x88] sm:$0xff]  ;;  %v96_v19 = vld [vmem:[%s4011_s2 + $0x90] sm:$0xff] }
   0x5   :  { %2512 = vmatpush3.bf16.msra.mxu0 %v2509_v3  ;;  %2769 = vmatprep.subr.bf16.mxu1 %v2509_v3  ;;  %v94_v14 = vld [vmem:[%s4011_s2 + $0x80] sm:$0xff]  ;;  %v79_v18 = vld [vmem:[%s4011_s2 + $0x8] sm:$0xff]  ;;  %v97_v20 = vld [vmem:[%s4011_s2 + $0x98] sm:$0xff] }
   0x6   :  { %2514 = vmatprep.subr.bf16.mxu0 %v2513_v5  ;;  %2773 = vmatpush3.bf16.msra.mxu1 %v2509_v3  ;;  %v2525_v16 = vpack.c.bf16 %v95_v15, %v94_v14  ;;  %v78_v17 = vld [vmem:[%s4011_s2] sm:$0xff]  ;;  %v39_v21 = vld [vmem:[%s4010_s0 + $0x8] sm:$0xff]  ;;  %v40_v22 = vld [vmem:[%s4010_s0 + $0x10] sm:$0xff]  ;;  %v2529_v26 = vpack.c.bf16 %v97_v20, %v96_v19 }
   0x7   :  { %2770 = vmatprep.subr.bf16.mxu1 %v2513_v5  ;;  %2279 = vmatprep.mubr.msk.f32.mxu1 %vm159_vm0, %v54_v12  ;;  %v55_v23 = vld [vmem:[%s4010_s0 + $0x88] sm:$0xff]  ;;  %v2527_v24 = vpack.c.bf16 %v79_v18, %v78_v17  ;;  %v56_v25 = vld [vmem:[%s4010_s0 + $0x90] sm:$0xff]  ;;  %v81_v28 = vld [vmem:[%s4011_s2 + $0x18] sm:$0xff] }
   0x8   :  { %v80_v27 = vld [vmem:[%s4011_s2 + $0x10] sm:$0xff]  ;;  %v98_v29 = vld [vmem:[%s4011_s2 + $0xa0] sm:$0xff]  ;;  %v99_v30 = vld [vmem:[%s4011_s2 + $0xa8] sm:$0xff] }
   0x9   :  { %2516 = vmatpush3.bf16.msra.mxu0 %v2513_v5  ;;  %v41_v31 = vld [vmem:[%s4010_s0 + $0x18] sm:$0xff]  ;;  %v2973_v32 = vld [vmem:[%s4010_s0 + $0x20] sm:$0xff]  ;;  %v2531_v34 = vpack.c.bf16 %v81_v28, %v80_v27  ;;  %v2533_v36 = vpack.c.bf16 %v99_v30, %v98_v29  ;;  %v83_v38 = vld [vmem:[%s4011_s2 + $0x28] sm:$0xff] }
   0xa   :  { %2518 = vmatprep.subr.bf16.mxu0 %v2517_v9  ;;  %2774 = vmatpush3.bf16.msra.mxu1 %v2513_v5  ;;  %v57_v33 = vld [vmem:[%s4010_s0 + $0x98] sm:$0xff]  ;;  %v58_v35 = vld [vmem:[%s4010_s0 + $0xa0] sm:$0xff]  ;;  %v100_v39 = vld [vmem:[%s4011_s2 + $0xb0] sm:$0xff] }
   0xb   :  { %2771 = vmatprep.subr.bf16.mxu1 %v2517_v9  ;;  %v82_v37 = vld [vmem:[%s4011_s2 + $0x20] sm:$0xff]  ;;  %v101_v40 = vld [vmem:[%s4011_s2 + $0xb8] sm:$0xff]  ;;  %v3000_v41 = vld [vmem:[%s4010_s0 + $0x28] sm:$0xff] }
   0xc   :  { %v3006_v42 = vld [vmem:[%s4010_s0 + $0x30] sm:$0xff]  ;;  %v59_v43 = vld [vmem:[%s4010_s0 + $0xa8] sm:$0xff]  ;;  %v2535_v44 = vpack.c.bf16 %v83_v38, %v82_v37  ;;  %v2537_v46 = vpack.c.bf16 %v101_v40, %v100_v39  ;;  %v3022_v47 = vld [vmem:[%s4010_s0 + $0x38] sm:$0xff] }
   0xd   :  { %2520 = vmatpush3.bf16.msra.mxu0 %v2517_v9  ;;  %v60_v45 = vld [vmem:[%s4010_s0 + $0xb0] sm:$0xff]  ;;  %v3028_v48 = vld [vmem:[%s4010_s0 + $0x40] sm:$0xff]  ;;  %v61_v49 = vld [vmem:[%s4010_s0 + $0xb8] sm:$0xff] }
   0xe   :  { %2522 = vmatprep.subr.bf16.mxu0 %v2521_v13  ;;  %2775 = vmatpush3.bf16.msra.mxu1 %v2517_v9  ;;  %v62_v50 = vld [vmem:[%s4010_s0 + $0xc0] sm:$0xff]  ;;  %v3044_v51 = vld [vmem:[%s4010_s0 + $0x48] sm:$0xff]  ;;  %v3050_v52 = vld [vmem:[%s4010_s0 + $0x50] sm:$0xff] }
   0xf   :  { %2772 = vmatprep.subr.bf16.mxu1 %v2521_v13  ;;  %v63_v53 = vld [vmem:[%s4010_s0 + $0xc8] sm:$0xff]  ;;  %v64_v54 = vld [vmem:[%s4010_s0 + $0xd0] sm:$0xff]  ;;  %v3066_v55 = vld [vmem:[%s4010_s0 + $0x58] sm:$0xff] }
  0x10   :  { %v3072_v56 = vld [vmem:[%s4010_s0 + $0x60] sm:$0xff]  ;;  %v65_v57 = vld [vmem:[%s4010_s0 + $0xd8] sm:$0xff]  ;;  %v3088_v59 = vld [vmem:[%s4010_s0 + $0x68] sm:$0xff] }
  0x11   :  { %2524 = vmatpush3.bf16.msra.mxu0 %v2521_v13  ;;  %v66_v58 = vld [vmem:[%s4010_s0 + $0xe0] sm:$0xff]  ;;  %v3094_v60 = vld [vmem:[%s4010_s0 + $0x70] sm:$0xff]  ;;  %v3100_v61 = vld [vmem:[%s4010_s0 + $0xe8] sm:$0xff] }
  0x12   :  { %2776 = vmatpush3.bf16.msra.mxu1 %v2521_v13  ;;  %v3105_v62 = vld [vmem:[%s4010_s0 + $0xf0] sm:$0xff]  ;;  %v3114_v63 = vld [vmem:[%s4010_s0 + $0x78] sm:$0xff]  ;;  %v102_v13 = vld [vmem:[%s4011_s2 + $0xc0] sm:$0xff] }
  0x13   :  { %2526 = vmatprep.subr.bf16.mxu1 %v2525_v16  ;;  %v3123_v3 = vld [vmem:[%s4010_s0 + $0xf8] sm:$0xff]  ;;  %v84_v5 = vld [vmem:[%s4011_s2 + $0x30] sm:$0xff]  ;;  %v103_v14 = vld [vmem:[%s4011_s2 + $0xc8] sm:$0xff] }
  0x14   :  { %2256 = vmatmul.mubr.msk.f32.vlgmr.msra.gmra.mrb[0].mxu0 %vm159_vm0, %v39_v21  ;;  %v85_v9 = vld [vmem:[%s4011_s2 + $0x38] sm:$0xff]  ;;  %v2541_v15 = vpack.c.bf16 %v103_v14, %v102_v13  ;;  %v87_v16 = vld [vmem:[%s4011_s2 + $0x48] sm:$0xff]  ;;  %v104_v18 = vld [vmem:[%s4011_s2 + $0xd0] sm:$0xff] }
  0x15   :  { %2258 = vmatprep.mubr.msk.f32.mxu0 %vm159_vm0, %v40_v22  ;;  %2280 = vmatmul.mubr.msk.f32.vlgmr.msra.gmra.mrb[0].mxu1 %vm159_vm0, %v55_v23  ;;  %v2539_v12 = vpack.c.bf16 %v85_v9, %v84_v5  ;;  %v105_v19 = vld [vmem:[%s4011_s2 + $0xd8] sm:$0xff]  ;;  %v88_v21 = vld [vmem:[%s4011_s2 + $0x50] sm:$0xff]  ;;  %v90_v27 = vld [vmem:[%s4011_s2 + $0x60] sm:$0xff] }
  0x16   :  { %2282 = vmatprep.mubr.msk.f32.mxu1 %vm159_vm0, %v56_v25  ;;  %2528 = vmatpush3.bf16.msra.mxu1 %v2527_v24  ;;  %v2545_v20 = vpack.c.bf16 %v105_v19, %v104_v18  ;;  %v89_v22 = vld [vmem:[%s4011_s2 + $0x58] sm:$0xff]  ;;  %v106_v24 = vld [vmem:[%s4011_s2 + $0xe0] sm:$0xff]  ;;  %v107_v25 = vld [vmem:[%s4011_s2 + $0xe8] sm:$0xff] }
  0x17   :  { %2530 = vmatprep.subr.bf16.mxu1 %v2529_v26  ;;  %v2547_v23 = vpack.c.bf16 %v89_v22, %v88_v21  ;;  %v2549_v26 = vpack.c.bf16 %v107_v25, %v106_v24  ;;  %v91_v28 = vld [vmem:[%s4011_s2 + $0x68] sm:$0xff]  ;;  %v108_v30 = vld [vmem:[%s4011_s2 + $0xf0] sm:$0xff]  ;;  %v126_v37 = vld [vmem:[%s4011_s2 + $0x180] sm:$0xff] }
  0x18   :  { %2259 = vmatmul.mubr.msk.f32.gmra.mrb[2].mxu0 %vm159_vm0, %v41_v31  ;;  %v2551_v29 = vpack.c.bf16 %v91_v28, %v90_v27  ;;  %v109_v31 = vld [vmem:[%s4011_s2 + $0xf8] sm:$0xff]  ;;  %v127_v38 = vld [vmem:[%s4011_s2 + $0x188] sm:$0xff]  ;;  %v142_v40 = vld [vmem:[%s4012_s3] sm:$0xff] }
  0x19   :  { %2261 = vmatprep.mubr.msk.f32.mxu0 %vm159_vm0, %v2973_v32  ;;  %2283 = vmatmul.mubr.msk.f32.gmra.mrb[2].mxu1 %vm159_vm0, %v57_v33  ;;  %v2553_v33 = vpack.c.bf16 %v109_v31, %v108_v30  ;;  %v2557_v39 = vpack.c.bf16 %v127_v38, %v126_v37  ;;  %v150_v9 = vld [vmem:[%s4012_s3 + $0x40] sm:$0xff]  ;;  %v152_v14 = vld [vmem:[%s4012_s3 + $0x50] sm:$0xff] }
  0x1a   :  { %2285 = vmatprep.mubr.msk.f32.mxu1 %vm159_vm0, %v58_v35  ;;  %2532 = vmatpush3.bf16.msra.mxu1 %v2531_v34  ;;  %v92_v34 = vld [vmem:[%s4011_s2 + $0x70] sm:$0xff]  ;;  %v93_v35 = vld [vmem:[%s4011_s2 + $0x78] sm:$0xff]  ;;  %v110_v28 = vld [vmem:[%s4011_s2 + $0x100] sm:$0xff] }
  0x1b   :  { %2534 = vmatprep.subr.bf16.mxu1 %v2533_v36  ;;  %v2555_v36 = vpack.c.bf16 %v93_v35, %v92_v34  ;;  %v156_v19 = vld [vmem:[%s4012_s3 + $0x70] sm:$0xff] }
  0x1c   :  { %2262 = vmatmul.mubr.msk.f32.gmra.mrb[4].mxu0 %vm159_vm0, %v3000_v41  ;;  %v128_v31 = vld [vmem:[%s4011_s2 + $0x190] sm:$0xff] }
  0x1d   :  { %2264 = vmatprep.mubr.msk.f32.mxu0 %vm159_vm0, %v3006_v42  ;;  %2286 = vmatmul.mubr.msk.f32.gmra.mrb[4].mxu1 %vm159_vm0, %v59_v43  ;;  %v143_v43 = vld [vmem:[%s4012_s3 + $0x8] sm:$0xff] }
  0x1e   :  { %2288 = vmatprep.mubr.msk.f32.mxu1 %vm159_vm0, %v60_v45  ;;  %2536 = vmatpush3.bf16.msra.mxu1 %v2535_v44  ;;  %v2589_v44 = vpack.c.bf16 %v143_v43, %v142_v40  ;;  %v144_v45 = vld [vmem:[%s4012_s3 + $0x10] sm:$0xff]  ;;  %v113_v40 = vld [vmem:[%s4011_s2 + $0x118] sm:$0xff] }
  0x1f   :  { %2538 = vmatprep.subr.bf16.mxu1 %v2537_v46  ;;  %v145_v46 = vld [vmem:[%s4012_s3 + $0x18] sm:$0xff] }
  0x20   :  { %2265 = vmatmul.mubr.msk.f32.gmra.mrb[6].mxu0 %vm159_vm0, %v3022_v47  ;;  %2590 = vmatprep.subr.bf16.mxu0 %v2589_v44 }
  0x21   :  { %2267 = vmatprep.mubr.msk.f32.mxu0 %vm159_vm0, %v3028_v48  ;;  %2289 = vmatmul.mubr.msk.f32.gmra.mrb[6].mxu1 %vm159_vm0, %v61_v49  ;;  %v2593_v49 = vpack.c.bf16 %v145_v46, %v144_v45  ;;  %v131_v45 = vld [vmem:[%s4011_s2 + $0x1a8] sm:$0xff] }
  0x22   :  { %2291 = vmatprep.mubr.msk.f32.mxu1 %vm159_vm0, %v62_v50  ;;  %2540 = vmatpush3.bf16.msra.mxu1 %v2539_v12  ;;  %v146_v50 = vld [vmem:[%s4012_s3 + $0x20] sm:$0xff]  ;;  %v151_v12 = vld [vmem:[%s4012_s3 + $0x48] sm:$0xff] }
  0x23   :  { %2542 = vmatprep.subr.bf16.mxu1 %v2541_v15  ;;  %2592 = vmatpush3.bf16.msra.mxu0 %v2589_v44  ;;  %v2605_v13 = vpack.c.bf16 %v151_v12, %v150_v9  ;;  %v153_v15 = vld [vmem:[%s4012_s3 + $0x58] sm:$0xff]  ;;  %v130_v44 = vld [vmem:[%s4011_s2 + $0x1a0] sm:$0xff]  ;;  %v132_v9 = vld [vmem:[%s4011_s2 + $0x1b0] sm:$0xff] }
  0x24   :  { %2268 = vmatmul.mubr.msk.f32.gmra.mrb[8].mxu0 %vm159_vm0, %v3044_v51  ;;  %2594 = vmatprep.subr.bf16.mxu0 %v2593_v49  ;;  %v133_v12 = vld [vmem:[%s4011_s2 + $0x1b8] sm:$0xff] }
  0x25   :  { %2270 = vmatprep.mubr.msk.f32.mxu0 %vm159_vm0, %v3050_v52  ;;  %2292 = vmatmul.mubr.msk.f32.gmra.mrb[8].mxu1 %vm159_vm0, %v63_v53  ;;  %v147_v53 = vld [vmem:[%s4012_s3 + $0x28] sm:$0xff] }
  0x26   :  { %2294 = vmatprep.mubr.msk.f32.mxu1 %vm159_vm0, %v64_v54  ;;  %v2597_v54 = vpack.c.bf16 %v147_v53, %v146_v50 }
  0x27   :  { %2596 = vmatpush3.bf16.msra.mxu0 %v2593_v49 }
  0x28   :  { %2271 = vmatmul.mubr.msk.f32.gmra.mrb[10].mxu0 %vm159_vm0, %v3066_v55  ;;  %2598 = vmatprep.subr.bf16.mxu0 %v2597_v54 }
  0x29   :  { %2273 = vmatprep.mubr.msk.f32.mxu0 %vm159_vm0, %v3072_v56  ;;  %2295 = vmatmul.mubr.msk.f32.gmra.mrb[10].mxu1 %vm159_vm0, %v65_v57  ;;  %v148_v57 = vld [vmem:[%s4012_s3 + $0x30] sm:$0xff] }
  0x2a   :  { %2297 = vmatprep.mubr.msk.f32.mxu1 %vm159_vm0, %v66_v58  ;;  %v149_v58 = vld [vmem:[%s4012_s3 + $0x38] sm:$0xff] }
  0x2b   :  { %2600 = vmatpush3.bf16.msra.mxu0 %v2597_v54  ;;  %v2601_v5 = vpack.c.bf16 %v149_v58, %v148_v57  ;;  %v2565_v54 = vpack.c.bf16 %v131_v45, %v130_v44  ;;  %v114_v57 = vld [vmem:[%s4011_s2 + $0x120] sm:$0xff]  ;;  %v115_v58 = vld [vmem:[%s4011_s2 + $0x128] sm:$0xff]  ;;  %v120_v44 = vld [vmem:[%s4011_s2 + $0x150] sm:$0xff] }
  0x2c   :  { %2274 = vmatmul.mubr.msk.f32.gmra.mrb[12].mxu0 %vm159_vm0, %v3088_v59  ;;  %v121_v45 = vld [vmem:[%s4011_s2 + $0x158] sm:$0xff] }
  0x2d   :  { %2276 = vmatprep.mubr.msk.f32.mxu0 %vm159_vm0, %v3094_v60  ;;  %2298 = vmatmul.mubr.msk.f32.gmra.mrb[12].mxu1 %vm159_vm0, %v3100_v61 }
  0x2e   :  { %2300 = vmatprep.mubr.msk.f32.mxu1 %vm159_vm0, %v3105_v62  ;;  %2602 = vmatprep.subr.bf16.mxu0 %v2601_v5 }
  0x2f   :  { %2604 = vmatpush3.bf16.msra.mxu0 %v2601_v5 }
  0x30   :  { %2277 = vmatmul.mubr.msk.f32.gmra.mrb[14].mxu0 %vm159_vm0, %v3114_v63  ;;  %2606 = vmatprep.subr.bf16.mxu0 %v2605_v13 }
  0x31   :  { %2301 = vmatmul.mubr.msk.f32.gmra.mrb[14].mxu1 %vm159_vm0, %v3123_v3  ;;  %2335 = vmatprep.mubr.f32.mxu0 %v2866_v0  ;;  %v86_v0 = vld [vmem:[%s4011_s2 + $0x40] sm:$0xff] }
  0x32   :  { %v2543_v17 = vpack.c.bf16 %v87_v16, %v86_v0  ;;  %v2609_v0 = vpack.c.bf16 %v153_v15, %v152_v14  ;;  %v154_v16 = vld [vmem:[%s4012_s3 + $0x60] sm:$0xff]  ;;  %v2567_v14 = vpack.c.bf16 %v115_v58, %v114_v57  ;;  %v123_v57 = vld [vmem:[%s4011_s2 + $0x168] sm:$0xff]  ;;  %v140_v58 = vld [vmem:[%s4011_s2 + $0x1f0] sm:$0xff] }
  0x33   :  { %2608 = vmatpush3.bf16.msra.mxu0 %v2605_v13 }
  0x34   :  { %2544 = vmatpush3.bf16.msra.mxu1 %v2543_v17  ;;  %2610 = vmatprep.subr.bf16.mxu0 %v2609_v0  ;;  %v155_v17 = vld [vmem:[%s4012_s3 + $0x68] sm:$0xff] }
  0x35   :  { %2546 = vmatprep.subr.bf16.mxu1 %v2545_v20  ;;  %v2613_v18 = vpack.c.bf16 %v155_v17, %v154_v16  ;;  %v157_v20 = vld [vmem:[%s4012_s3 + $0x78] sm:$0xff]  ;;  %v116_v17 = vld [vmem:[%s4011_s2 + $0x130] sm:$0xff] }
  0x36   :  { %v2617_v21 = vpack.c.bf16 %v157_v20, %v156_v19  ;;  %v134_v20 = vld [vmem:[%s4011_s2 + $0x1c0] sm:$0xff] }
  0x37   :  { %2612 = vmatpush3.bf16.msra.mxu0 %v2609_v0  ;;  %v2569_v0 = vpack.c.bf16 %v133_v12, %v132_v9 }
  0x38   :  { %2548 = vmatpush3.bf16.msra.mxu1 %v2547_v23  ;;  %2614 = vmatprep.subr.bf16.mxu0 %v2613_v18 }
  0x39   :  { %2550 = vmatprep.subr.bf16.mxu1 %v2549_v26 }
  0x3b   :  { %2616 = vmatpush3.bf16.msra.mxu0 %v2613_v18  ;;  %v117_v18 = vld [vmem:[%s4011_s2 + $0x138] sm:$0xff] }
  0x3c   :  { %2552 = vmatpush3.bf16.msra.mxu1 %v2551_v29  ;;  %2618 = vmatprep.subr.bf16.mxu0 %v2617_v21  ;;  %v111_v29 = vld [vmem:[%s4011_s2 + $0x108] sm:$0xff] }
  0x3d   :  { %2554 = vmatprep.subr.bf16.mxu1 %v2553_v33  ;;  %v129_v33 = vld [vmem:[%s4011_s2 + $0x198] sm:$0xff] }
  0x3e   :  { %v2561_v38 = vpack.c.bf16 %v129_v33, %v128_v31  ;;  %v118_v31 = vld [vmem:[%s4011_s2 + $0x140] sm:$0xff]  ;;  %v119_v33 = vld [vmem:[%s4011_s2 + $0x148] sm:$0xff] }
  0x3f   :  { %2620 = vmatpush3.bf16.msra.mxu0 %v2617_v21  ;;  %v135_v21 = vld [vmem:[%s4011_s2 + $0x1c8] sm:$0xff] }
  0x40   :  { %2556 = vmatpush3.bf16.msra.mxu1 %v2555_v36  ;;  %v2559_v36 = vpack.c.bf16 %v111_v29, %v110_v28  ;;  %v2573_v29 = vpack.c.bf16 %v135_v21, %v134_v20 }
  0x41   :  { %2558 = vmatprep.subr.bf16.mxu1 %v2557_v39  ;;  %v112_v39 = vld [vmem:[%s4011_s2 + $0x110] sm:$0xff] }
  0x42   :  { %2336 = vmatmul.mubr.f32.vlgmr.msra.gmra.mrb[16].mxu0 %v2871_v1  ;;  %v2563_v50 = vpack.c.bf16 %v113_v40, %v112_v39  ;;  %v2575_v39 = vpack.c.bf16 %v119_v33, %v118_v31 }
  0x43   :  { %2338 = vmatprep.mubr.f32.mxu0 %v2876_v2 }
  0x46   :  { %2339 = vmatmul.mubr.f32.gmra.mrb[18].mxu0 %v2883_v4 }
  0x47   :  { %2341 = vmatprep.mubr.f32.mxu0 %v2890_v6 }
  0x4a   :  { %2342 = vmatmul.mubr.f32.gmra.mrb[20].mxu0 %v2895_v7 }
  0x4b   :  { %2344 = vmatprep.mubr.f32.mxu0 %v2909_v10 }
  0x4e   :  { %2345 = vmatmul.mubr.f32.gmra.mrb[22].mxu0 %v2914_v11 }
  0x4f   :  { %2363 = vmatprep.mubr.msk.f32.mxu0 %vm159_vm0, %v2900_v8 }
  0xe7   :  { %v2257_v22 = vpop.f32.mrb[0].mxu0 }
  0xe8   :  { %v322_v23 = vpop.f32.mrb[1].mxu0  ;;  %v3247_v24 = vpop.f32.mrb[0].mxu1 }
  0xe9   :  { %v3249_v1 = vpop.f32.mrb[1].mxu1 }
  0xeb   :  { %v3251_v2 = vpop.f32.mrb[2].mxu0 }
  0xec   :  { %v332_v4 = vpop.f32.mrb[3].mxu0  ;;  %v3253_v25 = vpop.f32.mrb[2].mxu1 }
  0xed   :  { %v3255_v6 = vpop.f32.mrb[3].mxu1 }
  0xef   :  { %v3257_v7 = vpop.f32.mrb[4].mxu0 }
  0xf0   :  { %v3259_v10 = vpop.f32.mrb[5].mxu0  ;;  %v3261_v11 = vpop.f32.mrb[4].mxu1 }
  0xf1   :  { %v3263_v8 = vpop.f32.mrb[5].mxu1 }
  0xf3   :  { %v3265_v26 = vpop.f32.mrb[6].mxu0 }
  0xf4   :  { %v3267_v27 = vpop.f32.mrb[7].mxu0  ;;  %v3275_v30 = vpop.f32.mrb[6].mxu1 }
  0xf5   :  { %v3283_v34 = vpop.f32.mrb[7].mxu1 }
  0xf7   :  { %v2269_v35 = vpop.f32.mrb[8].mxu0 }
  0xf8   :  { %v362_v37 = vpop.f32.mrb[9].mxu0  ;;  %v3291_v43 = vpop.f32.mrb[8].mxu1 }
  0xf9   :  { %545 = vmatprep.mubr.f32.mxu1 %v362_v37  ;;  %v3299_v46 = vpop.f32.mrb[9].mxu1  ;;  %v137_v37 = vld [vmem:[%s4011_s2 + $0x1d8] sm:$0xff] }
  0xfa   :  { %546 = vmatmul.mubr.f32.vlgmr.msra.gmra.mrb[16].mxu1 %v322_v23  ;;  %v2571_v23 = vpack.c.bf16 %v117_v18, %v116_v17 }
  0xfb   :  { %550 = vmatprep.mubr.f32.mxu1 %v2269_v35  ;;  %2560 = vmatpush3.bf16.msra.mxu1 %v2559_v36  ;;  %v2272_v49 = vpop.f32.mrb[10].mxu0 }
  0xfc   :  { %2562 = vmatprep.subr.bf16.mxu1 %v2561_v38  ;;  %v372_v53 = vpop.f32.mrb[11].mxu0  ;;  %v3307_v5 = vpop.f32.mrb[10].mxu1 }
  0xfd   :  { %v3315_v13 = vpop.f32.mrb[11].mxu1 }
  0xfe   :  { %551 = vmatmul.mubr.f32.gmra.mrb[18].mxu1 %v2257_v22 }
  0xff   :  { %2564 = vmatpush3.bf16.msra.mxu1 %v2563_v50  ;;  %555 = vmatprep.mubr.f32.mxu1 %v372_v53  ;;  %v2275_v15 = vpop.f32.mrb[12].mxu0  ;;  %v2579_v50 = vpack.c.bf16 %v121_v45, %v120_v44 }
 0x100   :  { %2566 = vmatprep.subr.bf16.mxu1 %v2565_v54  ;;  %v382_v16 = vpop.f32.mrb[13].mxu0  ;;  %v2299_v19 = vpop.f32.mrb[12].mxu1  ;;  %v122_v54 = vld [vmem:[%s4011_s2 + $0x160] sm:$0xff] }
 0x101   :  { %v462_v22 = vpop.f32.mrb[13].mxu1  ;;  %v2583_v9 = vpack.c.bf16 %v123_v57, %v122_v54  ;;  %v3402_v57 = vld [vmem:[%s4013_s4] sm:$0xff] }
 0x102   :  { %556 = vmatmul.mubr.f32.gmra.mrb[20].mxu1 %v332_v4  ;;  %v136_v4 = vld [vmem:[%s4011_s2 + $0x1d0] sm:$0xff] }
 0x103   :  { %560 = vmatprep.mubr.f32.mxu1 %v2272_v49  ;;  %2568 = vmatpush3.bf16.msra.mxu1 %v2567_v14  ;;  %v2278_v28 = vpop.f32.mrb[14].mxu0  ;;  %v2577_v40 = vpack.c.bf16 %v137_v37, %v136_v4  ;;  %v138_v49 = vld [vmem:[%s4011_s2 + $0x1e0] sm:$0xff]  ;;  %v124_v14 = vld [vmem:[%s4011_s2 + $0x170] sm:$0xff]  ;;  %v796_v37 = vlaneseq }
 0x104   :  { %2570 = vmatprep.subr.bf16.mxu1 %v2569_v0  ;;  %v392_v35 = vpop.f32.mrb[15].mxu0  ;;  %v2302_v36 = vpop.f32.mrb[14].mxu1 }
 0x105   :  { %v472_v38 = vpop.f32.mrb[15].mxu1  ;;  %v3396_v44 = vshrl.u32 %v796_v37, 7 }
 0x106   :  { %561 = vmatmul.mubr.f32.gmra.mrb[22].mxu1 %v3251_v2  ;;  %v139_v2 = vld [vmem:[%s4011_s2 + $0x1e8] sm:$0xff] }
 0x107   :  { %2572 = vmatpush3.bf16.msra.mxu1 %v2571_v23  ;;  %565 = vmatprep.mubr.f32.mxu1 %v382_v16  ;;  %v2581_v53 = vpack.c.bf16 %v139_v2, %v138_v49 }
 0x108   :  { %2574 = vmatprep.subr.bf16.mxu1 %v2573_v29 }
 0x10a   :  { %566 = vmatmul.mubr.f32.gmra.mrb[24].mxu1 %v3259_v10  ;;  %v141_v10 = vld [vmem:[%s4011_s2 + $0x1f8] sm:$0xff] }
 0x10b   :  { %570 = vmatprep.mubr.f32.mxu1 %v2275_v15  ;;  %2576 = vmatpush3.bf16.msra.mxu1 %v2575_v39  ;;  %v2585_v12 = vpack.c.bf16 %v141_v10, %v140_v58  ;;  %v125_v15 = vld [vmem:[%s4011_s2 + $0x178] sm:$0xff] }
 0x10c   :  { %2578 = vmatprep.subr.bf16.mxu1 %v2577_v40  ;;  %v2587_v0 = vpack.c.bf16 %v125_v15, %v124_v14 }
 0x10e   :  { %571 = vmatmul.mubr.f32.gmra.mrb[26].mxu1 %v3257_v7 }
 0x10f   :  { %2580 = vmatpush3.bf16.msra.mxu1 %v2579_v50  ;;  %575 = vmatprep.mubr.f32.mxu1 %v392_v35 }
 0x110   :  { %2582 = vmatprep.subr.bf16.mxu1 %v2581_v53  ;;  %v798_v53 = vsub.s32 0, %v3396_v44 }
 0x112   :  { %576 = vmatmul.mubr.f32.gmra.mrb[28].mxu1 %v3267_v27 }
 0x113   :  { %580 = vmatprep.mubr.f32.mxu1 %v2278_v28  ;;  %2584 = vmatpush3.bf16.msra.mxu1 %v2583_v9 }
 0x114   :  { %2586 = vmatprep.subr.bf16.mxu1 %v2585_v12  ;;  %v799_v12 = vrot.slane %v3402_v57, %v798_v53 }
 0x116   :  { %581 = vmatmul.mubr.f32.gmra.mrb[30].mxu1 %v3265_v26 }
 0x117   :  { %2588 = vmatpush3.bf16.msra.mxu1 %v2587_v0  ;;  %650 = vmatprep.mubr.f32.mxu1 %v3299_v46 }
 0x11a   :  { %651 = vmatmul.mubr.f32.vlgmr.msra.gmra.mrb[32].mxu1 %v3249_v1 }
 0x11b   :  { %655 = vmatprep.mubr.f32.mxu1 %v3291_v43 }
 0x11e   :  { %656 = vmatmul.mubr.f32.gmra.mrb[34].mxu1 %v3247_v24  ;;  %v2337_v24 = vpop.f32.mrb[16].mxu0 }
 0x11f   :  { %660 = vmatprep.mubr.f32.mxu1 %v3315_v13  ;;  %v757_v1 = vpop.f32.mrb[17].mxu0 }
 0x120   :  { %v2340_v7 = vpop.f32.mrb[18].mxu0 }
 0x122   :  { %661 = vmatmul.mubr.f32.gmra.mrb[36].mxu1 %v3255_v6  ;;  %v767_v6 = vpop.f32.mrb[19].mxu0 }
 0x123   :  { %665 = vmatprep.mubr.f32.mxu1 %v3307_v5  ;;  %v3388_v26 = vpop.f32.mrb[20].mxu0 }
 0x124   :  { %v3390_v27 = vpop.f32.mrb[21].mxu0 }
 0x126   :  { %666 = vmatmul.mubr.f32.gmra.mrb[38].mxu1 %v3253_v25  ;;  %v3392_v25 = vpop.f32.mrb[22].mxu0 }
 0x127   :  { %670 = vmatprep.mubr.f32.mxu1 %v462_v22 }
 0x12a   :  { %671 = vmatmul.mubr.f32.gmra.mrb[40].mxu1 %v3263_v8  ;;  %v3394_v8 = vpop.f32.mrb[23].mxu0 }
 0x12b   :  { %675 = vmatprep.mubr.f32.mxu1 %v2299_v19 }
 0x12e   :  { %676 = vmatmul.mubr.f32.gmra.mrb[42].mxu1 %v3261_v11 }
 0x12f   :  { %680 = vmatprep.mubr.f32.mxu1 %v472_v38 }
 0x132   :  { %681 = vmatmul.mubr.f32.gmra.mrb[44].mxu1 %v3283_v34 }
 0x133   :  { %685 = vmatprep.mubr.f32.mxu1 %v2302_v36 }
 0x136   :  { %686 = vmatmul.mubr.f32.gmra.mrb[46].mxu1 %v3275_v30 }
 0x1cd   :  { %v1933_v43 = vpop.f32.mrb[16].mxu1 }
 0x1ce   :  { %v1934_v11 = vpop.f32.mrb[17].mxu1 }
 0x1cf   :  { %v1935_v46 = vadd.f32 %v1934_v11, %v1933_v43 }
 0x1d1   :  { %v1936_v5 = vpop.f32.mrb[18].mxu1 }
 0x1d2   :  { %v1937_v34 = vpop.f32.mrb[19].mxu1 }
 0x1d3   :  { %v1938_v13 = vadd.f32 %v1937_v34, %v1936_v5 }
 0x1d5   :  { %v1939_v16 = vpop.f32.mrb[20].mxu1 }
 0x1d6   :  { %v1940_v30 = vpop.f32.mrb[21].mxu1 }
 0x1d7   :  { %v1941_v17 = vadd.f32 %v1940_v30, %v1939_v16 }
 0x1d9   :  { %v1942_v18 = vpop.f32.mrb[22].mxu1 }
 0x1da   :  { %v1943_v19 = vpop.f32.mrb[23].mxu1 }
 0x1db   :  { %v1944_v20 = vadd.f32 %v1943_v19, %v1942_v18 }
 0x1dd   :  { %v1945_v21 = vpop.f32.mrb[24].mxu1 }
 0x1de   :  { %v1946_v22 = vpop.f32.mrb[25].mxu1 }
 0x1df   :  { %v1947_v23 = vadd.f32 %v1946_v22, %v1945_v21 }
 0x1e1   :  { %v1948_v28 = vpop.f32.mrb[26].mxu1 }
 0x1e2   :  { %v1949_v29 = vpop.f32.mrb[27].mxu1 }
 0x1e3   :  { %v1950_v31 = vadd.f32 %v1949_v29, %v1948_v28 }
 0x1e5   :  { %v1951_v33 = vpop.f32.mrb[28].mxu1 }
 0x1e6   :  { %v1952_v35 = vpop.f32.mrb[29].mxu1 }
 0x1e7   :  { %v1953_v36 = vadd.f32 %v1952_v35, %v1951_v33 }
 0x1e9   :  { %v1954_v4 = vpop.f32.mrb[30].mxu1 }
 0x1ea   :  { %v1955_v38 = vpop.f32.mrb[31].mxu1 }
 0x1eb   :  { %v1956_v39 = vadd.f32 %v1955_v38, %v1954_v4 }
 0x1ed   :  { %v1989_v40 = vpop.f32.mrb[32].mxu1 }
 0x1ee   :  { %v1990_v45 = vpop.f32.mrb[33].mxu1 }
 0x1ef   :  { %v1991_v49 = vadd.f32 %v1990_v45, %v1989_v40 }
 0x1f1   :  { %v1992_v2 = vpop.f32.mrb[34].mxu1  ;;  %v653_v50 = vadd.f32 %v1991_v49, %v1935_v46 }
 0x1f2   :  { %v1993_v54 = vpop.f32.mrb[35].mxu1 }
 0x1f3   :  { %v1994_v58 = vadd.f32 %v1993_v54, %v1992_v2  ;;  %v758_v10 = vadd.f32 %v757_v1, %v653_v50 }
 0x1f5   :  { %v658_v9 = vadd.f32 %v1994_v58, %v1938_v13  ;;  %v1995_v14 = vpop.f32.mrb[36].mxu1  ;;  %v800_v11 = vadd.f32 %v799_v12, %v758_v10 }
 0x1f6   :  { %v1996_v15 = vpop.f32.mrb[37].mxu1 }
 0x1f7   :  { %v763_v0 = vadd.f32 %v2337_v24, %v658_v9  ;;  %v1997_v43 = vadd.f32 %v1996_v15, %v1995_v14 }
 0x1f9   :  { %v801_v46 = vadd.f32 %v799_v12, %v763_v0  ;;  %v1998_v5 = vpop.f32.mrb[38].mxu1  ;;  %v663_v34 = vadd.f32 %v1997_v43, %v1941_v17 }
 0x1fa   :  { %v1999_v16 = vpop.f32.mrb[39].mxu1 }
 0x1fb   :  { %v808_v30 = vadd.f32 %v801_v46, %v800_v11  ;;  %v2000_v18 = vadd.f32 %v1999_v16, %v1998_v5  ;;  %v768_v19 = vadd.f32 %v767_v6, %v663_v34 }
 0x1fd   :  { %v668_v21 = vadd.f32 %v2000_v18, %v1944_v20  ;;  %v802_v22 = vadd.f32 %v799_v12, %v768_v19  ;;  %v2001_v1 = vpop.f32.mrb[40].mxu1 }
 0x1fe   :  { %v2002_v13 = vpop.f32.mrb[41].mxu1 }
 0x1ff   :  { %v773_v28 = vadd.f32 %v2340_v7, %v668_v21  ;;  %v809_v29 = vadd.f32 %v808_v30, %v802_v22  ;;  %v2003_v33 = vadd.f32 %v2002_v13, %v2001_v1 }
 0x201   :  { %v803_v35 = vadd.f32 %v799_v12, %v773_v28  ;;  %v2004_v4 = vpop.f32.mrb[42].mxu1  ;;  %v673_v37 = vadd.f32 %v2003_v33, %v1947_v23 }
 0x202   :  { %v2005_v24 = vpop.f32.mrb[43].mxu1 }
 0x203   :  { %v2006_v38 = vadd.f32 %v2005_v24, %v2004_v4  ;;  %v778_v40 = vadd.f32 %v3390_v27, %v673_v37  ;;  %v810_v45 = vadd.f32 %v809_v29, %v803_v35 }
 0x205   :  { %v678_v17 = vadd.f32 %v2006_v38, %v1950_v31  ;;  %v804_v49 = vadd.f32 %v799_v12, %v778_v40  ;;  %v2007_v2 = vpop.f32.mrb[44].mxu1 }
 0x206   :  { %v2008_v50 = vpop.f32.mrb[45].mxu1 }
 0x207   :  { %v783_v6 = vadd.f32 %v3388_v26, %v678_v17  ;;  %v811_v20 = vadd.f32 %v810_v45, %v804_v49  ;;  %v2009_v54 = vadd.f32 %v2008_v50, %v2007_v2 }
 0x209   :  { %v805_v58 = vadd.f32 %v799_v12, %v783_v6  ;;  %v2010_v7 = vpop.f32.mrb[46].mxu1  ;;  %v683_v10 = vadd.f32 %v2009_v54, %v1953_v36  ;;  %v825_v36 = vsub.s32 3, %v3396_v44 }
 0x20a   :  { %v2011_v9 = vpop.f32.mrb[47].mxu1 }
 0x20b   :  { %v2012_v14 = vadd.f32 %v2011_v9, %v2010_v7  ;;  %v788_v23 = vadd.f32 %v3394_v8, %v683_v10  ;;  %v812_v15 = vadd.f32 %v811_v20, %v805_v58  ;;  %v915_v7 = vld [vmem:[%s4014_s5 + $0x80] sm:$0xff]  ;;  %v916_v10 = vld [vmem:[%s4014_s5 + $0x88] sm:$0xff] }
 0x20c   :  { %v899_v9 = vld [vmem:[%s4014_s5] sm:$0xff] }
 0x20d   :  { %v688_v0 = vadd.f32 %v2012_v14, %v1956_v39  ;;  %v806_v43 = vadd.f32 %v799_v12, %v788_v23  ;;  %v2637_v14 = vpack.c.bf16 %v916_v10, %v915_v7  ;;  %v900_v23 = vld [vmem:[%s4014_s5 + $0x8] sm:$0xff] }
 0x20f   :  { %v793_v27 = vadd.f32 %v3392_v25, %v688_v0  ;;  %v813_v31 = vadd.f32 %v812_v15, %v806_v43  ;;  %v917_v15 = vld [vmem:[%s4014_s5 + $0x90] sm:$0xff]  ;;  %v918_v0 = vld [vmem:[%s4014_s5 + $0x98] sm:$0xff]  ;;  %2638 = vmatprep.subr.bf16.mxu1 %v2637_v14 }
 0x211   :  { %v807_v5 = vadd.f32 %v799_v12, %v793_v27  ;;  %v2639_v27 = vpack.c.bf16 %v900_v23, %v899_v9 }
 0x213   :  { %v814_v34 = vadd.f32 %v813_v31, %v807_v5  ;;  %v2641_v31 = vpack.c.bf16 %v918_v0, %v917_v15  ;;  %2640 = vmatpush3.bf16.msra.mxu1 %v2639_v27 }
 0x215   :  { %v815_v16 = vrot.slane %v814_v34, 4  ;;  %2642 = vmatprep.subr.bf16.mxu1 %v2641_v31 }
 0x217   :  { %v816_v30 = vadd.f32 %v815_v16, %v814_v34  ;;  %v902_v34 = vld [vmem:[%s4014_s5 + $0x18] sm:$0xff]  ;;  %v919_v16 = vld [vmem:[%s4014_s5 + $0xa0] sm:$0xff] }
 0x219   :  { %v817_v26 = vrot.slane %v816_v30, 2 }
 0x21b   :  { %v818_v18 = vadd.f32 %v817_v26, %v816_v30  ;;  %v920_v30 = vld [vmem:[%s4014_s5 + $0xa8] sm:$0xff] }
 0x21d   :  { %v819_v19 = vrot.slane %v818_v18, 1 }
 0x21f   :  { %v820_v21 = vadd.f32 %v819_v19, %v818_v18  ;;  %v2645_v19 = vpack.c.bf16 %v920_v30, %v919_v16 }
 0x221   :  { %v821_v1 = vmul.f32 0.015625, %v820_v21  ;;  %v903_v21 = vld [vmem:[%s4014_s5 + $0x20] sm:$0xff] }
 0x223   :  { %v822_v13 = vmul.f32 %v821_v1, %v3402_v57  ;;  %v904_v1 = vld [vmem:[%s4014_s5 + $0x28] sm:$0xff] }
 0x225   :  { %v826_v8 = vrot.slane %v822_v13, %v825_v36 }
 0x227   :  { %v3415_v39 = vsub.f32 %v800_v11, %v826_v8  ;;  %v3417_v25 = vsub.f32 %v801_v46, %v826_v8  ;;  %v3419_v12 = vsub.f32 %v802_v22, %v826_v8  ;;  %v3421_v28 = vsub.f32 %v803_v35, %v826_v8 }
 0x228   :  { %v3423_v29 = vsub.f32 %v804_v49, %v826_v8  ;;  %v3425_v33 = vsub.f32 %v805_v58, %v826_v8  ;;  %v3427_v4 = vsub.f32 %v806_v43, %v826_v8  ;;  %v3429_v37 = vsub.f32 %v807_v5, %v826_v8  ;;  %v901_v5 = vld [vmem:[%s4014_s5 + $0x10] sm:$0xff] }
 0x229   :  { %v835_v24 = vmul.f32 %v3415_v39, %v3415_v39  ;;  %v836_v11 = vmul.f32 %v3417_v25, %v3417_v25  ;;  %v837_v46 = vmul.f32 %v3419_v12, %v3419_v12  ;;  %v838_v35 = vmul.f32 %v3421_v28, %v3421_v28  ;;  %v921_v8 = vld [vmem:[%s4014_s5 + $0xb0] sm:$0xff] }
 0x22a   :  { %v839_v40 = vmul.f32 %v3423_v29, %v3423_v29  ;;  %v840_v17 = vmul.f32 %v3425_v33, %v3425_v33  ;;  %v841_v2 = vmul.f32 %v3427_v4, %v3427_v4  ;;  %v842_v6 = vmul.f32 %v3429_v37, %v3429_v37 }
 0x22b   :  { %v843_v22 = vadd.f32 %v836_v11, %v835_v24  ;;  %v2643_v18 = vpack.c.bf16 %v902_v34, %v901_v5  ;;  %v922_v24 = vld [vmem:[%s4014_s5 + $0xb8] sm:$0xff] }
 0x22d   :  { %v844_v38 = vadd.f32 %v843_v22, %v837_v46  ;;  %2644 = vmatpush3.bf16.msra.mxu1 %v2643_v18  ;;  %v2647_v46 = vpack.c.bf16 %v904_v1, %v903_v21  ;;  %v2649_v22 = vpack.c.bf16 %v922_v24, %v921_v8 }
 0x22e   :  { %2646 = vmatprep.subr.bf16.mxu1 %v2645_v19 }
 0x22f   :  { %v845_v45 = vadd.f32 %v844_v38, %v838_v35 }
 0x231   :  { %v846_v49 = vadd.f32 %v845_v45, %v839_v40  ;;  %2648 = vmatpush3.bf16.msra.mxu1 %v2647_v46  ;;  %v859_v45 = vsub.s32 1, %v3396_v44  ;;  %v964_v46 = vld [vmem:[%s4015_s6 + $0x8] sm:$0xff] }
 0x232   :  { %2650 = vmatprep.subr.bf16.mxu1 %v2649_v22 }
 0x233   :  { %v847_v50 = vadd.f32 %v846_v49, %v840_v17  ;;  %v881_v17 = vsub.s32 2, %v3396_v44  ;;  %v860_v49 = vrot.slane %v3402_v57, %v859_v45 }
 0x235   :  { %v848_v20 = vadd.f32 %v847_v50, %v841_v2  ;;  %v882_v2 = vrot.slane %v3402_v57, %v881_v17  ;;  %v861_v50 = vmul.f32 %v860_v49, %v3415_v39  ;;  %v867_v7 = vmul.f32 %v860_v49, %v3427_v4 }
 0x236   :  { %v865_v10 = vmul.f32 %v860_v49, %v3423_v29  ;;  %v866_v9 = vmul.f32 %v860_v49, %v3425_v33  ;;  %v868_v14 = vmul.f32 %v860_v49, %v3429_v37 }
 0x237   :  { %v849_v54 = vadd.f32 %v848_v20, %v842_v6  ;;  %v862_v6 = vmul.f32 %v860_v49, %v3417_v25  ;;  %v863_v20 = vmul.f32 %v860_v49, %v3419_v12 }
 0x239   :  { %v850_v58 = vrot.slane %v849_v54, 4 }
 0x23b   :  { %v851_v43 = vadd.f32 %v850_v58, %v849_v54  ;;  %v864_v54 = vmul.f32 %v860_v49, %v3421_v28 }
 0x23d   :  { %v852_v26 = vrot.slane %v851_v43, 2 }
 0x23f   :  { %v853_v13 = vadd.f32 %v852_v26, %v851_v43 }
 0x241   :  { %v854_v11 = vrot.slane %v853_v13, 1 }
 0x243   :  { %v855_v35 = vadd.f32 %v854_v11, %v853_v13  ;;  %v963_v11 = vld [vmem:[%s4015_s6] sm:$0xff] }
 0x245   :  { %v856_v38 = vmul.f32 0.015625, %v855_v35  ;;  %v2701_v35 = vpack.c.bf16 %v964_v46, %v963_v11  ;;  %v2799_v11 = vld [vmem:[%s4010_s0 + $0xe0] sm:$0xff]  ;;  %v912_v46 = vld [vmem:[%s4014_s5 + $0x68] sm:$0xff] }
 0x247   :  { %v869_v40 = vadd.f32 1e-05, %v856_v38  ;;  %v965_v38 = vld [vmem:[%s4015_s6 + $0x10] sm:$0xff] }
 0x249   :  { %2780 = vrsqrt.f32 %v869_v40  ;;  %v966_v40 = vld [vmem:[%s4015_s6 + $0x18] sm:$0xff] }
 0x24a   :  { %v2705_v49 = vpack.c.bf16 %v966_v40, %v965_v38  ;;  %v930_v38 = vld [vmem:[%s4014_s5 + $0xf8] sm:$0xff] }
 0x253   :  { %v2781_v58 = vpop.eup %2780 }
 0x254   :  { %v871_v23 = vmul.f32 %v2781_v58, %v861_v50  ;;  %v872_v15 = vmul.f32 %v2781_v58, %v862_v6  ;;  %v873_v57 = vmul.f32 %v2781_v58, %v863_v20  ;;  %v874_v0 = vmul.f32 %v2781_v58, %v864_v54  ;;  %v968_v50 = vld [vmem:[%s4015_s6 + $0x28] sm:$0xff]  ;;  %v2785_v20 = vld [vmem:[%s4010_s0 + $0x10] sm:$0xff] }
 0x255   :  { %v875_v39 = vmul.f32 %v2781_v58, %v865_v10  ;;  %v876_v43 = vmul.f32 %v2781_v58, %v866_v9  ;;  %v877_v25 = vmul.f32 %v2781_v58, %v867_v7  ;;  %v878_v27 = vmul.f32 %v2781_v58, %v868_v14  ;;  %v2784_v6 = vld [vmem:[%s4010_s0 + $0x8] sm:$0xff]  ;;  %v969_v58 = vld [vmem:[%s4015_s6 + $0x30] sm:$0xff]  ;;  %v970_v7 = vld [vmem:[%s4015_s6 + $0x38] sm:$0xff] }
 0x256   :  { %v3505_v12 = vadd.f32 %v882_v2, %v871_v23  ;;  %v3507_v28 = vadd.f32 %v882_v2, %v872_v15  ;;  %v3509_v31 = vadd.f32 %v882_v2, %v873_v57  ;;  %v3511_v4 = vadd.f32 %v882_v2, %v874_v0  ;;  %v2786_v10 = vld [vmem:[%s4010_s0 + $0x18] sm:$0xff]  ;;  %v971_v14 = vld [vmem:[%s4015_s6 + $0x40] sm:$0xff]  ;;  %v972_v23 = vld [vmem:[%s4015_s6 + $0x48] sm:$0xff] }
 0x257   :  { %v3513_v29 = vadd.f32 %v882_v2, %v875_v39  ;;  %v3515_v33 = vadd.f32 %v882_v2, %v876_v43  ;;  %v3525_v26 = vadd.f32 %v882_v2, %v877_v25  ;;  %v3533_v1 = vadd.f32 %v882_v2, %v878_v27  ;;  %v967_v2 = vld [vmem:[%s4015_s6 + $0x20] sm:$0xff]  ;;  %v973_v15 = vld [vmem:[%s4015_s6 + $0x50] sm:$0xff]  ;;  %v974_v57 = vld [vmem:[%s4015_s6 + $0x58] sm:$0xff] }
 0x258   :  { %v891_v37 = vmax.f32 %v3505_v12, 0.0  ;;  %v892_v5 = vmax.f32 %v3507_v28, 0.0  ;;  %v893_v34 = vmax.f32 %v3509_v31, 0.0  ;;  %v894_v16 = vmax.f32 %v3511_v4, 0.0  ;;  %v976_v0 = vld [vmem:[%s4015_s6 + $0x68] sm:$0xff]  ;;  %v978_v39 = vld [vmem:[%s4015_s6 + $0x78] sm:$0xff] }
 0x259   :  { %v895_v19 = vmax.f32 %v3513_v29, 0.0  ;;  %v896_v21 = vmax.f32 %v3515_v33, 0.0  ;;  %v897_v8 = vmax.f32 %v3525_v26, 0.0  ;;  %v898_v24 = vmax.f32 %v3533_v1, 0.0  ;;  %v2793_v43 = vld [vmem:[%s4010_s0 + $0xb0] sm:$0xff]  ;;  %v2794_v25 = vld [vmem:[%s4010_s0 + $0xb8] sm:$0xff] }
 0x25a   :  { %v2621_v30 = vpack.c.bf16 %v892_v5, %v891_v37  ;;  %v2625_v18 = vpack.c.bf16 %v894_v16, %v893_v34  ;;  %v2709_v54 = vpack.c.bf16 %v968_v50, %v967_v2  ;;  %v2713_v9 = vpack.c.bf16 %v970_v7, %v969_v58  ;;  %v2795_v27 = vld [vmem:[%s4010_s0 + $0xc0] sm:$0xff]  ;;  %v924_v28 = vld [vmem:[%s4014_s5 + $0xc8] sm:$0xff]  ;;  %v910_v26 = vld [vmem:[%s4014_s5 + $0x58] sm:$0xff] }
 0x25b   :  { %v2629_v13 = vpack.c.bf16 %v896_v21, %v895_v19  ;;  %v2633_v22 = vpack.c.bf16 %v898_v24, %v897_v8  ;;  %v923_v12 = vld [vmem:[%s4014_s5 + $0xc0] sm:$0xff]  ;;  %v908_v29 = vld [vmem:[%s4014_s5 + $0x48] sm:$0xff]  ;;  %v914_v2 = vld [vmem:[%s4014_s5 + $0x78] sm:$0xff] }
 0x25c   :  { %2622 = vmatprep.subr.bf16.mxu0 %v2621_v30  ;;  %v2653_v31 = vpack.c.bf16 %v924_v28, %v923_v12  ;;  %v907_v4 = vld [vmem:[%s4014_s5 + $0x40] sm:$0xff]  ;;  %v928_v1 = vld [vmem:[%s4014_s5 + $0xe8] sm:$0xff]  ;;  %v937_v12 = vld [vmem:[%s4014_s5 + $0x130] sm:$0xff] }
 0x25d   :  { %2624 = vmatpush3.bf16.msra.mxu0 %v2621_v30  ;;  %v2796_v30 = vld [vmem:[%s4010_s0 + $0xc8] sm:$0xff]  ;;  %v2655_v33 = vpack.c.bf16 %v908_v29, %v907_v4  ;;  %v938_v28 = vld [vmem:[%s4014_s5 + $0x138] sm:$0xff] }
 0x25e   :  { %2626 = vmatprep.subr.bf16.mxu0 %v2625_v18  ;;  %v956_v4 = vld [vmem:[%s4014_s5 + $0x1c8] sm:$0xff] }
 0x261   :  { %2628 = vmatpush3.bf16.msra.mxu0 %v2625_v18  ;;  %v2797_v18 = vld [vmem:[%s4010_s0 + $0xd0] sm:$0xff] }
 0x262   :  { %2630 = vmatprep.subr.bf16.mxu0 %v2629_v13 }
 0x265   :  { %2632 = vmatpush3.bf16.msra.mxu0 %v2629_v13  ;;  %v2798_v13 = vld [vmem:[%s4010_s0 + $0xd8] sm:$0xff] }
 0x266   :  { %2634 = vmatprep.subr.bf16.mxu0 %v2633_v22 }
 0x269   :  { %2636 = vmatpush3.bf16.msra.mxu0 %v2633_v22 }
 0x26a   :  { %2702 = vmatprep.subr.bf16.mxu0 %v2701_v35 }
 0x26c   :  { %2364 = vmatmul.mubr.msk.f32.vlgmr.msra.gmra.mrb[24].mxu0 %vm159_vm0, %v2784_v6  ;;  %v947_v6 = vld [vmem:[%s4014_s5 + $0x180] sm:$0xff] }
 0x26d   :  { %2366 = vmatprep.mubr.msk.f32.mxu0 %vm159_vm0, %v2785_v20  ;;  %2704 = vmatpush3.bf16.msra.mxu0 %v2701_v35  ;;  %v929_v35 = vld [vmem:[%s4014_s5 + $0xf0] sm:$0xff]  ;;  %v948_v20 = vld [vmem:[%s4014_s5 + $0x188] sm:$0xff] }
 0x26e   :  { %2706 = vmatprep.subr.bf16.mxu0 %v2705_v49  ;;  %v2665_v40 = vpack.c.bf16 %v930_v38, %v929_v35  ;;  %v959_v35 = vld [vmem:[%s4014_s5 + $0x1e0] sm:$0xff]  ;;  %v960_v38 = vld [vmem:[%s4014_s5 + $0x1e8] sm:$0xff] }
 0x270   :  { %2367 = vmatmul.mubr.msk.f32.gmra.mrb[26].mxu0 %vm159_vm0, %v2786_v10 }
 0x271   :  { %2369 = vmatprep.mubr.msk.f32.mxu0 %vm159_vm0, %v2973_v32  ;;  %2708 = vmatpush3.bf16.msra.mxu0 %v2705_v49  ;;  %v2717_v32 = vpack.c.bf16 %v972_v23, %v971_v14  ;;  %v913_v49 = vld [vmem:[%s4014_s5 + $0x70] sm:$0xff] }
 0x272   :  { %2710 = vmatprep.subr.bf16.mxu0 %v2709_v54  ;;  %v2667_v50 = vpack.c.bf16 %v914_v2, %v913_v49 }
 0x274   :  { %2370 = vmatmul.mubr.msk.f32.gmra.mrb[28].mxu0 %vm159_vm0, %v3000_v41  ;;  %v2721_v41 = vpack.c.bf16 %v974_v57, %v973_v15  ;;  %v931_v57 = vld [vmem:[%s4014_s5 + $0x100] sm:$0xff] }
 0x275   :  { %2372 = vmatprep.mubr.msk.f32.mxu0 %vm159_vm0, %v3006_v42  ;;  %2712 = vmatpush3.bf16.msra.mxu0 %v2709_v54  ;;  %v975_v42 = vld [vmem:[%s4015_s6 + $0x60] sm:$0xff]  ;;  %v2669_v54 = vpack.c.bf16 %v948_v20, %v947_v6  ;;  %v944_v20 = vld [vmem:[%s4014_s5 + $0x168] sm:$0xff] }
 0x276   :  { %2714 = vmatprep.subr.bf16.mxu0 %v2713_v9  ;;  %v943_v6 = vld [vmem:[%s4014_s5 + $0x160] sm:$0xff] }
 0x278   :  { %2373 = vmatmul.mubr.msk.f32.gmra.mrb[30].mxu0 %vm159_vm0, %v3022_v47  ;;  %v2725_v47 = vpack.c.bf16 %v976_v0, %v975_v42  ;;  %v949_v42 = vld [vmem:[%s4014_s5 + $0x190] sm:$0xff]  ;;  %v950_v0 = vld [vmem:[%s4014_s5 + $0x198] sm:$0xff] }
 0x279   :  { %2375 = vmatprep.mubr.msk.f32.mxu0 %vm159_vm0, %v3028_v48  ;;  %2716 = vmatpush3.bf16.msra.mxu0 %v2713_v9  ;;  %v977_v48 = vld [vmem:[%s4015_s6 + $0x70] sm:$0xff] }
 0x27a   :  { %2718 = vmatprep.subr.bf16.mxu0 %v2717_v32 }
 0x27c   :  { %2376 = vmatmul.mubr.msk.f32.gmra.mrb[32].mxu0 %vm159_vm0, %v3044_v51  ;;  %v2729_v51 = vpack.c.bf16 %v978_v39, %v977_v48 }
 0x27d   :  { %2378 = vmatprep.mubr.msk.f32.mxu0 %vm159_vm0, %v3050_v52  ;;  %2720 = vmatpush3.bf16.msra.mxu0 %v2717_v32  ;;  %v2787_v52 = vld [vmem:[%s4010_s0 + $0x80] sm:$0xff] }
 0x27e   :  { %2722 = vmatprep.subr.bf16.mxu0 %v2721_v41 }
 0x280   :  { %2379 = vmatmul.mubr.msk.f32.gmra.mrb[34].mxu0 %vm159_vm0, %v3066_v55  ;;  %v2788_v55 = vld [vmem:[%s4010_s0 + $0x88] sm:$0xff] }
 0x281   :  { %2381 = vmatprep.mubr.msk.f32.mxu0 %vm159_vm0, %v3072_v56  ;;  %2724 = vmatpush3.bf16.msra.mxu0 %v2721_v41  ;;  %v2789_v56 = vld [vmem:[%s4010_s0 + $0x90] sm:$0xff]  ;;  %v932_v41 = vld [vmem:[%s4014_s5 + $0x108] sm:$0xff] }
 0x282   :  { %2726 = vmatprep.subr.bf16.mxu0 %v2725_v47  ;;  %v2671_v48 = vpack.c.bf16 %v932_v41, %v931_v57  ;;  %v945_v57 = vld [vmem:[%s4014_s5 + $0x170] sm:$0xff]  ;;  %v946_v41 = vld [vmem:[%s4014_s5 + $0x178] sm:$0xff] }
 0x284   :  { %2382 = vmatmul.mubr.msk.f32.gmra.mrb[36].mxu0 %vm159_vm0, %v3088_v59  ;;  %v2790_v59 = vld [vmem:[%s4010_s0 + $0x98] sm:$0xff] }
 0x285   :  { %2384 = vmatprep.mubr.msk.f32.mxu0 %vm159_vm0, %v3094_v60  ;;  %2728 = vmatpush3.bf16.msra.mxu0 %v2725_v47  ;;  %v2791_v60 = vld [vmem:[%s4010_s0 + $0xa0] sm:$0xff] }
 0x286   :  { %2730 = vmatprep.subr.bf16.mxu0 %v2729_v51 }
 0x288   :  { %2385 = vmatmul.mubr.msk.f32.gmra.mrb[38].mxu0 %vm159_vm0, %v3114_v63  ;;  %v2792_v63 = vld [vmem:[%s4010_s0 + $0xa8] sm:$0xff] }
 0x289   :  { %2387 = vmatprep.mubr.msk.f32.mxu0 %vm159_vm0, %v2787_v52  ;;  %2732 = vmatpush3.bf16.msra.mxu0 %v2729_v51  ;;  %v2673_v51 = vpack.c.bf16 %v950_v0, %v949_v42  ;;  %v933_v52 = vld [vmem:[%s4014_s5 + $0x110] sm:$0xff] }
 0x28c   :  { %2388 = vmatmul.mubr.msk.f32.gmra.mrb[40].mxu0 %vm159_vm0, %v2788_v55  ;;  %v934_v55 = vld [vmem:[%s4014_s5 + $0x118] sm:$0xff] }
 0x28d   :  { %2390 = vmatprep.mubr.msk.f32.mxu0 %vm159_vm0, %v2789_v56  ;;  %v951_v56 = vld [vmem:[%s4014_s5 + $0x1a0] sm:$0xff] }
 0x290   :  { %2391 = vmatmul.mubr.msk.f32.gmra.mrb[42].mxu0 %vm159_vm0, %v2790_v59  ;;  %v952_v59 = vld [vmem:[%s4014_s5 + $0x1a8] sm:$0xff] }
 0x291   :  { %2393 = vmatprep.mubr.msk.f32.mxu0 %vm159_vm0, %v2791_v60 }
 0x294   :  { %2394 = vmatmul.mubr.msk.f32.gmra.mrb[44].mxu0 %vm159_vm0, %v2792_v63  ;;  %v2675_v63 = vpack.c.bf16 %v934_v55, %v933_v52 }
 0x295   :  { %2396 = vmatprep.mubr.msk.f32.mxu0 %vm159_vm0, %v2793_v43 }
 0x298   :  { %2397 = vmatmul.mubr.msk.f32.gmra.mrb[46].mxu0 %vm159_vm0, %v2794_v25  ;;  %v2677_v25 = vpack.c.bf16 %v952_v59, %v951_v56 }
 0x299   :  { %2399 = vmatprep.mubr.msk.f32.mxu0 %vm159_vm0, %v2795_v27  ;;  %v935_v27 = vld [vmem:[%s4014_s5 + $0x120] sm:$0xff] }
 0x29c   :  { %2400 = vmatmul.mubr.msk.f32.gmra.mrb[48].mxu0 %vm159_vm0, %v2796_v30  ;;  %v936_v30 = vld [vmem:[%s4014_s5 + $0x128] sm:$0xff] }
 0x29d   :  { %2402 = vmatprep.mubr.msk.f32.mxu0 %vm159_vm0, %v2797_v18  ;;  %v953_v18 = vld [vmem:[%s4014_s5 + $0x1b0] sm:$0xff] }
 0x2a0   :  { %2403 = vmatmul.mubr.msk.f32.gmra.mrb[50].mxu0 %vm159_vm0, %v2798_v13  ;;  %v954_v13 = vld [vmem:[%s4014_s5 + $0x1b8] sm:$0xff] }
 0x2a1   :  { %2405 = vmatprep.mubr.msk.f32.mxu0 %vm159_vm0, %v2799_v11 }
 0x2a4   :  { %2406 = vmatmul.mubr.msk.f32.gmra.mrb[52].mxu0 %vm159_vm0, %v3100_v61  ;;  %v905_v61 = vld [vmem:[%s4014_s5 + $0x30] sm:$0xff] }
 0x2a5   :  { %2408 = vmatprep.mubr.msk.f32.mxu0 %vm159_vm0, %v3105_v62  ;;  %v906_v62 = vld [vmem:[%s4014_s5 + $0x38] sm:$0xff] }
 0x2a8   :  { %2409 = vmatmul.mubr.msk.f32.gmra.mrb[54].mxu0 %vm159_vm0, %v3123_v3  ;;  %v2651_v3 = vpack.c.bf16 %v906_v62, %v905_v61  ;;  %v2679_v61 = vpack.c.bf16 %v936_v30, %v935_v27 }
 0x2a9   :  { %2443 = vmatprep.mubr.f32.mxu0 %v891_v37  ;;  %v925_v37 = vld [vmem:[%s4014_s5 + $0xd0] sm:$0xff] }
 0x2aa   :  { %2652 = vmatpush3.bf16.msra.mxu1 %v2651_v3  ;;  %v2681_v3 = vpack.c.bf16 %v954_v13, %v953_v18  ;;  %v2800_v18 = vmov 0.0|0.0  }
 0x2ab   :  { %2654 = vmatprep.subr.bf16.mxu1 %v2653_v31  ;;  %v955_v31 = vld [vmem:[%s4014_s5 + $0x1c0] sm:$0xff]  ;;  %2745 = vmatprep.subr.bf16.mxu0 %v2800_v18 }
 0x2ac   :  { %2444 = vmatmul.mubr.f32.vlgmr.msra.gmra.mrb[56].mxu0 %v892_v5  ;;  %v926_v5 = vld [vmem:[%s4014_s5 + $0xd8] sm:$0xff] }
 0x2ad   :  { %2446 = vmatprep.mubr.f32.mxu0 %v893_v34  ;;  %v2657_v34 = vpack.c.bf16 %v926_v5, %v925_v37  ;;  %v2685_v5 = vpack.c.bf16 %v956_v4, %v955_v31 }
 0x2ae   :  { %2656 = vmatpush3.bf16.msra.mxu1 %v2655_v33  ;;  %v2683_v33 = vpack.c.bf16 %v938_v28, %v937_v12 }
 0x2af   :  { %2658 = vmatprep.subr.bf16.mxu1 %v2657_v34  ;;  %v939_v34 = vld [vmem:[%s4014_s5 + $0x140] sm:$0xff] }
 0x2b0   :  { %2447 = vmatmul.mubr.f32.gmra.mrb[58].mxu0 %v894_v16  ;;  %v909_v16 = vld [vmem:[%s4014_s5 + $0x50] sm:$0xff] }
 0x2b1   :  { %2449 = vmatprep.mubr.f32.mxu0 %v895_v19  ;;  %v2659_v19 = vpack.c.bf16 %v910_v26, %v909_v16  ;;  %v940_v16 = vld [vmem:[%s4014_s5 + $0x148] sm:$0xff]  ;;  %v957_v26 = vld [vmem:[%s4014_s5 + $0x1d0] sm:$0xff] }
 0x2b3   :  { %2660 = vmatpush3.bf16.msra.mxu1 %v2659_v19  ;;  %v958_v19 = vld [vmem:[%s4014_s5 + $0x1d8] sm:$0xff] }
 0x2b4   :  { %2450 = vmatmul.mubr.f32.gmra.mrb[60].mxu0 %v896_v21  ;;  %v927_v21 = vld [vmem:[%s4014_s5 + $0xe0] sm:$0xff] }
 0x2b5   :  { %2452 = vmatprep.mubr.f32.mxu0 %v897_v8  ;;  %v2661_v8 = vpack.c.bf16 %v928_v1, %v927_v21  ;;  %v2687_v1 = vpack.c.bf16 %v940_v16, %v939_v34 }
 0x2b7   :  { %2662 = vmatprep.subr.bf16.mxu1 %v2661_v8 }
 0x2b8   :  { %2453 = vmatmul.mubr.f32.gmra.mrb[62].mxu0 %v898_v24  ;;  %v911_v24 = vld [vmem:[%s4014_s5 + $0x60] sm:$0xff] }
 0x2b9   :  { %v2663_v22 = vpack.c.bf16 %v912_v46, %v911_v24  ;;  %v2689_v24 = vpack.c.bf16 %v958_v19, %v957_v26  ;;  %v941_v46 = vld [vmem:[%s4014_s5 + $0x150] sm:$0xff] }
 0x2bb   :  { %2664 = vmatpush3.bf16.msra.mxu1 %v2663_v22  ;;  %v942_v22 = vld [vmem:[%s4014_s5 + $0x158] sm:$0xff] }
 0x2bc   :  { %2666 = vmatprep.subr.bf16.mxu1 %v2665_v40  ;;  %v2691_v49 = vpack.c.bf16 %v942_v22, %v941_v46  ;;  %v2802_v22 = vmov 0.0  }
 0x2bd   :  { %2506 = vmatprep.mubr.msk.f32.mxu0 %vm2801_vm1, %v2802_v22 }
 0x2bf   :  { %2668 = vmatpush3.bf16.msra.mxu1 %v2667_v50  ;;  %v2693_v50 = vpack.c.bf16 %v960_v38, %v959_v35 }
 0x2c0   :  { %2670 = vmatprep.subr.bf16.mxu1 %v2669_v54  ;;  %v961_v54 = vld [vmem:[%s4014_s5 + $0x1f0] sm:$0xff] }
 0x33f   :  { %v2365_v58 = vpop.f32.mrb[24].mxu0 }
 0x340   :  { %v1046_v7 = vpop.f32.mrb[25].mxu0 }
 0x343   :  { %v2368_v10 = vpop.f32.mrb[26].mxu0 }
 0x344   :  { %v1056_v9 = vpop.f32.mrb[27].mxu0 }
 0x347   :  { %v3763_v14 = vpop.f32.mrb[28].mxu0 }
 0x348   :  { %v3765_v23 = vpop.f32.mrb[29].mxu0 }
 0x34b   :  { %v3767_v32 = vpop.f32.mrb[30].mxu0 }
 0x34c   :  { %v3769_v15 = vpop.f32.mrb[31].mxu0 }
 0x34f   :  { %v2377_v47 = vpop.f32.mrb[32].mxu0 }
 0x350   :  { %v1086_v39 = vpop.f32.mrb[33].mxu0 }
 0x351   :  { %1269 = vmatprep.mubr.f32.mxu1 %v1086_v39 }
 0x352   :  { %1270 = vmatmul.mubr.f32.vlgmr.msra.gmra.mrb[48].mxu1 %v1046_v7 }
 0x353   :  { %v2380_v60 = vpop.f32.mrb[34].mxu0  ;;  %1274 = vmatprep.mubr.f32.mxu1 %v2377_v47  ;;  %2672 = vmatpush3.bf16.msra.mxu1 %v2671_v48 }
 0x354   :  { %v1096_v43 = vpop.f32.mrb[35].mxu0  ;;  %2674 = vmatprep.subr.bf16.mxu1 %v2673_v51 }
 0x356   :  { %1275 = vmatmul.mubr.f32.gmra.mrb[50].mxu1 %v2365_v58  ;;  %v962_v58 = vld [vmem:[%s4014_s5 + $0x1f8] sm:$0xff] }
 0x357   :  { %v2383_v11 = vpop.f32.mrb[36].mxu0  ;;  %1279 = vmatprep.mubr.f32.mxu1 %v1096_v43  ;;  %2676 = vmatpush3.bf16.msra.mxu1 %v2675_v63 }
 0x358   :  { %v1106_v62 = vpop.f32.mrb[37].mxu0  ;;  %2678 = vmatprep.subr.bf16.mxu1 %v2677_v25 }
 0x35a   :  { %1280 = vmatmul.mubr.f32.gmra.mrb[52].mxu1 %v1056_v9 }
 0x35b   :  { %v2386_v29 = vpop.f32.mrb[38].mxu0  ;;  %1284 = vmatprep.mubr.f32.mxu1 %v2380_v60  ;;  %2680 = vmatpush3.bf16.msra.mxu1 %v2679_v61 }
 0x35c   :  { %v1116_v37 = vpop.f32.mrb[39].mxu0  ;;  %2682 = vmatprep.subr.bf16.mxu1 %v2681_v3 }
 0x35e   :  { %1285 = vmatmul.mubr.f32.gmra.mrb[54].mxu1 %v2368_v10  ;;  %v2695_v10 = vpack.c.bf16 %v944_v20, %v943_v6  ;;  %v1700_v20 = vld [vmem:[%s4016_s9 + $0x18] sm:$0xff] }
 0x35f   :  { %v2389_v21 = vpop.f32.mrb[40].mxu0  ;;  %1289 = vmatprep.mubr.f32.mxu1 %v1106_v62  ;;  %2684 = vmatpush3.bf16.msra.mxu1 %v2683_v33 }
 0x360   :  { %v1126_v8 = vpop.f32.mrb[41].mxu0  ;;  %2686 = vmatprep.subr.bf16.mxu1 %v2685_v5 }
 0x362   :  { %1290 = vmatmul.mubr.f32.gmra.mrb[56].mxu1 %v3765_v23  ;;  %v2697_v23 = vpack.c.bf16 %v962_v58, %v961_v54 }
 0x363   :  { %v2392_v40 = vpop.f32.mrb[42].mxu0  ;;  %1294 = vmatprep.mubr.f32.mxu1 %v2383_v11  ;;  %2688 = vmatpush3.bf16.msra.mxu1 %v2687_v1 }
 0x364   :  { %v1136_v2 = vpop.f32.mrb[43].mxu0  ;;  %2690 = vmatprep.subr.bf16.mxu1 %v2689_v24 }
 0x366   :  { %1295 = vmatmul.mubr.f32.gmra.mrb[58].mxu1 %v3763_v14  ;;  %v2699_v14 = vpack.c.bf16 %v946_v41, %v945_v57  ;;  %v3915_v41 = vld [vmem:[%s4017_s7] sm:$0xff] }
 0x367   :  { %v2395_v7 = vpop.f32.mrb[44].mxu0  ;;  %1299 = vmatprep.mubr.f32.mxu1 %v1116_v37  ;;  %2692 = vmatpush3.bf16.msra.mxu1 %v2691_v49  ;;  %v1698_v49 = vld [vmem:[%s4016_s9 + $0x8] sm:$0xff] }
 0x368   :  { %v1146_v9 = vpop.f32.mrb[45].mxu0  ;;  %2694 = vmatprep.subr.bf16.mxu1 %v2693_v50 }
 0x36a   :  { %1300 = vmatmul.mubr.f32.gmra.mrb[60].mxu1 %v3769_v15 }
 0x36b   :  { %v2398_v42 = vpop.f32.mrb[46].mxu0  ;;  %1304 = vmatprep.mubr.f32.mxu1 %v2386_v29  ;;  %2696 = vmatpush3.bf16.msra.mxu1 %v2695_v10  ;;  %v1701_v10 = vld [vmem:[%s4016_s9 + $0x20] sm:$0xff] }
 0x36c   :  { %v1156_v0 = vpop.f32.mrb[47].mxu0  ;;  %2698 = vmatprep.subr.bf16.mxu1 %v2697_v23 }
 0x36e   :  { %1305 = vmatmul.mubr.f32.gmra.mrb[62].mxu1 %v3767_v32 }
 0x36f   :  { %v2401_v47 = vpop.f32.mrb[48].mxu0  ;;  %2700 = vmatpush3.bf16.msra.mxu1 %v2699_v14 }
 0x370   :  { %v1166_v48 = vpop.f32.mrb[49].mxu0  ;;  %2733 = vmatprep.subr.bf16.mxu1 %v2800_v18 }
 0x371   :  { %1374 = vmatprep.mubr.f32.mxu1 %v1166_v48  ;;  %v1703_v48 = vld [vmem:[%s4016_s9 + $0x30] sm:$0xff] }
 0x372   :  { %1375 = vmatmul.mubr.f32.vlgmr.msra.gmra.mrb[64].mxu1 %v1126_v8 }
 0x373   :  { %1379 = vmatprep.mubr.f32.mxu1 %v2401_v47  ;;  %v2404_v39 = vpop.f32.mrb[50].mxu0 }
 0x374   :  { %v1176_v51 = vpop.f32.mrb[51].mxu0 }
 0x376   :  { %1380 = vmatmul.mubr.f32.gmra.mrb[66].mxu1 %v2389_v21 }
 0x377   :  { %1384 = vmatprep.mubr.f32.mxu1 %v1176_v51  ;;  %v2407_v52 = vpop.f32.mrb[52].mxu0  ;;  %v3928_v51 = vrot.slane %v3915_v41, %v798_v53 }
 0x378   :  { %v1186_v15 = vpop.f32.mrb[53].mxu0 }
 0x37a   :  { %1385 = vmatmul.mubr.f32.gmra.mrb[68].mxu1 %v1136_v2  ;;  %v1699_v2 = vld [vmem:[%s4016_s9 + $0x10] sm:$0xff] }
 0x37b   :  { %1389 = vmatprep.mubr.f32.mxu1 %v2404_v39  ;;  %v2410_v55 = vpop.f32.mrb[54].mxu0  ;;  %v1704_v39 = vld [vmem:[%s4016_s9 + $0x38] sm:$0xff] }
 0x37c   :  { %v1196_v56 = vpop.f32.mrb[55].mxu0 }
 0x37e   :  { %1390 = vmatmul.mubr.f32.gmra.mrb[70].mxu1 %v2392_v40  ;;  %v1697_v40 = vld [vmem:[%s4016_s9] sm:$0xff] }
 0x37f   :  { %v3865_v59 = vpop.f32.mrb[56].mxu0  ;;  %1394 = vmatprep.mubr.f32.mxu1 %v1186_v15  ;;  %v2746_v6 = vpack.c.bf16 %v1698_v49, %v1697_v40  ;;  %v1710_v40 = vld [vmem:[%s4016_s9 + $0x68] sm:$0xff] }
 0x380   :  { %v3867_v32 = vpop.f32.mrb[57].mxu0 }
 0x381   :  { %2747 = vmatpush3.bf16.msra.mxu0 %v2746_v6 }
 0x382   :  { %1395 = vmatmul.mubr.f32.gmra.mrb[72].mxu1 %v1146_v9  ;;  %2748 = vmatprep.subr.bf16.mxu0 %v2800_v18  ;;  %v1702_v9 = vld [vmem:[%s4016_s9 + $0x28] sm:$0xff] }
 0x383   :  { %1399 = vmatprep.mubr.f32.mxu1 %v2407_v52  ;;  %v3869_v60 = vpop.f32.mrb[58].mxu0  ;;  %v2752_v47 = vpack.c.bf16 %v1702_v9, %v1701_v10 }
 0x384   :  { %v3871_v63 = vpop.f32.mrb[59].mxu0 }
 0x386   :  { %1400 = vmatmul.mubr.f32.gmra.mrb[74].mxu1 %v2395_v7  ;;  %v2749_v7 = vpack.c.bf16 %v1700_v20, %v1699_v2 }
 0x387   :  { %v3873_v43 = vpop.f32.mrb[60].mxu0  ;;  %1404 = vmatprep.mubr.f32.mxu1 %v1196_v56 }
 0x388   :  { %v3875_v25 = vpop.f32.mrb[61].mxu0  ;;  %2750 = vmatpush3.bf16.msra.mxu0 %v2749_v7  ;;  %v1712_v7 = vld [vmem:[%s4016_s9 + $0x78] sm:$0xff] }
 0x389   :  { %2751 = vmatprep.subr.bf16.mxu0 %v2800_v18 }
 0x38a   :  { %1405 = vmatmul.mubr.f32.gmra.mrb[76].mxu1 %v1156_v0 }
 0x38b   :  { %1409 = vmatprep.mubr.f32.mxu1 %v2410_v55  ;;  %v3877_v27 = vpop.f32.mrb[62].mxu0 }
 0x38c   :  { %v3879_v30 = vpop.f32.mrb[63].mxu0  ;;  %2753 = vmatpush3.bf16.msra.mxu0 %v2752_v47 }
 0x38d   :  { %2754 = vmatprep.subr.bf16.mxu0 %v2800_v18 }
 0x38e   :  { %1410 = vmatmul.mubr.f32.gmra.mrb[78].mxu1 %v2398_v42 }
 0x38f   :  { %2471 = vmatprep.mubr.msk.f32.mxu1 %vm2801_vm1, %v2802_v22 }
 0x425   :  { %v2109_v13 = vpop.f32.mrb[48].mxu1 }
 0x426   :  { %v2110_v11 = vpop.f32.mrb[49].mxu1 }
 0x427   :  { %v2111_v61 = vadd.f32 %v2110_v11, %v2109_v13  ;;  %v2755_v13 = vpack.c.bf16 %v1704_v39, %v1703_v48  ;;  %v1705_v11 = vld [vmem:[%s4016_s9 + $0x40] sm:$0xff] }
 0x429   :  { %v2112_v62 = vpop.f32.mrb[50].mxu1  ;;  %2756 = vmatpush3.bf16.msra.mxu0 %v2755_v13 }
 0x42a   :  { %v2113_v3 = vpop.f32.mrb[51].mxu1  ;;  %2757 = vmatprep.subr.bf16.mxu0 %v2800_v18 }
 0x42b   :  { %v2114_v12 = vadd.f32 %v2113_v3, %v2112_v62 }
 0x42d   :  { %v2115_v28 = vpop.f32.mrb[52].mxu1 }
 0x42e   :  { %v2116_v31 = vpop.f32.mrb[53].mxu1 }
 0x42f   :  { %v2117_v4 = vadd.f32 %v2116_v31, %v2115_v28 }
 0x431   :  { %v2118_v29 = vpop.f32.mrb[54].mxu1 }
 0x432   :  { %v2119_v33 = vpop.f32.mrb[55].mxu1 }
 0x433   :  { %v3883_v37 = vadd.f32 %v2119_v33, %v2118_v29 }
 0x435   :  { %v2121_v5 = vpop.f32.mrb[56].mxu1 }
 0x436   :  { %v2122_v34 = vpop.f32.mrb[57].mxu1 }
 0x437   :  { %v3885_v16 = vadd.f32 %v2122_v34, %v2121_v5  ;;  %v1707_v5 = vld [vmem:[%s4016_s9 + $0x50] sm:$0xff] }
 0x439   :  { %v2124_v26 = vpop.f32.mrb[58].mxu1 }
 0x43a   :  { %v2125_v19 = vpop.f32.mrb[59].mxu1 }
 0x43b   :  { %v3887_v21 = vadd.f32 %v2125_v19, %v2124_v26 }
 0x43d   :  { %v2127_v1 = vpop.f32.mrb[60].mxu1 }
 0x43e   :  { %v2128_v8 = vpop.f32.mrb[61].mxu1 }
 0x43f   :  { %v3889_v24 = vadd.f32 %v2128_v8, %v2127_v1 }
 0x441   :  { %v2130_v46 = vpop.f32.mrb[62].mxu1 }
 0x442   :  { %v2131_v35 = vpop.f32.mrb[63].mxu1 }
 0x443   :  { %v3891_v38 = vadd.f32 %v2131_v35, %v2130_v46  ;;  %v1709_v35 = vld [vmem:[%s4016_s9 + $0x60] sm:$0xff] }
 0x445   :  { %v2165_v50 = vpop.f32.mrb[64].mxu1 }
 0x446   :  { %v2166_v54 = vpop.f32.mrb[65].mxu1 }
 0x447   :  { %v2167_v58 = vadd.f32 %v2166_v54, %v2165_v50  ;;  %v2764_v54 = vpack.c.bf16 %v1710_v40, %v1709_v35 }
 0x449   :  { %v1377_v23 = vadd.f32 %v2167_v58, %v2111_v61  ;;  %v2168_v57 = vpop.f32.mrb[66].mxu1  ;;  %v1706_v61 = vld [vmem:[%s4016_s9 + $0x48] sm:$0xff]  ;;  %v1711_v58 = vld [vmem:[%s4016_s9 + $0x70] sm:$0xff] }
 0x44a   :  { %v2169_v42 = vpop.f32.mrb[67].mxu1  ;;  %v2758_v33 = vpack.c.bf16 %v1706_v61, %v1705_v11 }
 0x44b   :  { %v1482_v14 = vadd.f32 %v3867_v32, %v1377_v23  ;;  %v2170_v0 = vadd.f32 %v2169_v42, %v2168_v57 }
 0x44c   :  { %2759 = vmatpush3.bf16.msra.mxu0 %v2758_v33 }
 0x44d   :  { %v1382_v52 = vadd.f32 %v2170_v0, %v2114_v12  ;;  %v2171_v15 = vpop.f32.mrb[68].mxu1  ;;  %v3939_v53 = vadd.f32 %v3928_v51, %v1482_v14  ;;  %2760 = vmatprep.subr.bf16.mxu0 %v2800_v18  ;;  %v2767_v14 = vpack.c.bf16 %v1712_v7, %v1711_v58 }
 0x44e   :  { %v2172_v55 = vpop.f32.mrb[69].mxu1 }
 0x44f   :  { %v1487_v56 = vadd.f32 %v3865_v59, %v1382_v52  ;;  %v2173_v32 = vadd.f32 %v2172_v55, %v2171_v15 }
 0x451   :  { %v3942_v62 = vadd.f32 %v3928_v51, %v1487_v56  ;;  %v1387_v59 = vadd.f32 %v2173_v32, %v2117_v4  ;;  %v2174_v3 = vpop.f32.mrb[70].mxu1  ;;  %v1708_v4 = vld [vmem:[%s4016_s9 + $0x58] sm:$0xff] }
 0x452   :  { %v2175_v12 = vpop.f32.mrb[71].mxu1  ;;  %v2761_v22 = vpack.c.bf16 %v1708_v4, %v1707_v5 }
 0x453   :  { %v1532_v28 = vadd.f32 %v3942_v62, %v3939_v53  ;;  %v1492_v31 = vadd.f32 %v3871_v63, %v1387_v59  ;;  %v2176_v29 = vadd.f32 %v2175_v12, %v2174_v3 }
 0x454   :  { %2762 = vmatpush3.bf16.msra.mxu0 %v2761_v22 }
 0x455   :  { %v1526_v34 = vadd.f32 %v3928_v51, %v1492_v31  ;;  %v1392_v26 = vadd.f32 %v2176_v29, %v3883_v37  ;;  %v2177_v19 = vpop.f32.mrb[72].mxu1  ;;  %2763 = vmatprep.subr.bf16.mxu0 %v2800_v18 }
 0x456   :  { %v2178_v1 = vpop.f32.mrb[73].mxu1 }
 0x457   :  { %v1533_v63 = vadd.f32 %v1532_v28, %v1526_v34  ;;  %v1497_v8 = vadd.f32 %v3869_v60, %v1392_v26  ;;  %v2179_v46 = vadd.f32 %v2178_v1, %v2177_v19 }
 0x458   :  { %2765 = vmatpush3.bf16.msra.mxu0 %v2764_v54 }
 0x459   :  { %v1527_v37 = vadd.f32 %v3928_v51, %v1497_v8  ;;  %v1397_v49 = vadd.f32 %v2179_v46, %v3885_v16  ;;  %v2180_v2 = vpop.f32.mrb[74].mxu1  ;;  %2766 = vmatprep.subr.bf16.mxu0 %v2800_v18 }
 0x45a   :  { %v2181_v50 = vpop.f32.mrb[75].mxu1 }
 0x45b   :  { %v1534_v60 = vadd.f32 %v1533_v63, %v1527_v37  ;;  %v1502_v6 = vadd.f32 %v3875_v25, %v1397_v49  ;;  %v2182_v20 = vadd.f32 %v2181_v50, %v2180_v2 }
 0x45c   :  { %2768 = vmatpush3.bf16.msra.mxu0 %v2767_v14 }
 0x45d   :  { %v1528_v16 = vadd.f32 %v3928_v51, %v1502_v6  ;;  %v1402_v10 = vadd.f32 %v2182_v20, %v3887_v21  ;;  %v2183_v9 = vpop.f32.mrb[76].mxu1 }
 0x45e   :  { %v2184_v23 = vpop.f32.mrb[77].mxu1 }
 0x45f   :  { %v1535_v25 = vadd.f32 %v1534_v60, %v1528_v16  ;;  %v1507_v57 = vadd.f32 %v3873_v43, %v1402_v10  ;;  %v2185_v42 = vadd.f32 %v2184_v23, %v2183_v9  ;;  %v1584_v9 = vrot.slane %v3915_v41, %v859_v45 }
 0x460   :  { %v1606_v23 = vrot.slane %v3915_v41, %v881_v17 }
 0x461   :  { %v1529_v0 = vadd.f32 %v3928_v51, %v1507_v57  ;;  %v1407_v47 = vadd.f32 %v2185_v42, %v3889_v24  ;;  %v2186_v48 = vpop.f32.mrb[78].mxu1 }
 0x462   :  { %v2187_v39 = vpop.f32.mrb[79].mxu1 }
 0x463   :  { %v1536_v52 = vadd.f32 %v1535_v25, %v1529_v0  ;;  %v1512_v15 = vadd.f32 %v3879_v30, %v1407_v47  ;;  %v2188_v21 = vadd.f32 %v2187_v39, %v2186_v48 }
 0x465   :  { %v1530_v55 = vadd.f32 %v3928_v51, %v1512_v15  ;;  %v1412_v43 = vadd.f32 %v2188_v21, %v3891_v38 }
 0x467   :  { %v1537_v56 = vadd.f32 %v1536_v52, %v1530_v55  ;;  %v1517_v32 = vadd.f32 %v3877_v27, %v1412_v43 }
 0x469   :  { %v1531_v13 = vadd.f32 %v3928_v51, %v1517_v32 }
 0x46b   :  { %v1538_v11 = vadd.f32 %v1537_v56, %v1531_v13 }
 0x46d   :  { %v1539_v61 = vrot.slane %v1538_v11, 4 }
 0x46f   :  { %v1540_v59 = vadd.f32 %v1539_v61, %v1538_v11 }
 0x471   :  { %v1541_v24 = vrot.slane %v1540_v59, 2 }
 0x473   :  { %v1542_v3 = vadd.f32 %v1541_v24, %v1540_v59 }
 0x475   :  { %v1543_v12 = vrot.slane %v1542_v3, 1 }
 0x477   :  { %v1544_v28 = vadd.f32 %v1543_v12, %v1542_v3 }
 0x479   :  { %v1545_v31 = vmul.f32 0.015625, %v1544_v28 }
 0x47b   :  { %v1546_v30 = vmul.f32 %v1545_v31, %v3915_v41 }
 0x47d   :  { %v1550_v29 = vrot.slane %v1546_v30, %v825_v36 }
 0x47f   :  { %v1551_v38 = vsub.f32 %v3939_v53, %v1550_v29  ;;  %v1552_v33 = vsub.f32 %v3942_v62, %v1550_v29  ;;  %v1553_v27 = vsub.f32 %v1526_v34, %v1550_v29  ;;  %v1554_v5 = vsub.f32 %v1527_v37, %v1550_v29 }
 0x480   :  { %v1555_v51 = vsub.f32 %v1528_v16, %v1550_v29  ;;  %v1556_v4 = vsub.f32 %v1529_v0, %v1550_v29  ;;  %v1557_v26 = vsub.f32 %v1530_v55, %v1550_v29  ;;  %v1558_v19 = vsub.f32 %v1531_v13, %v1550_v29 }
 0x481   :  { %v1559_v1 = vmul.f32 %v1551_v38, %v1551_v38  ;;  %v1560_v63 = vmul.f32 %v1552_v33, %v1552_v33  ;;  %v1561_v8 = vmul.f32 %v1553_v27, %v1553_v27  ;;  %v1562_v22 = vmul.f32 %v1554_v5, %v1554_v5 }
 0x482   :  { %v1563_v40 = vmul.f32 %v1555_v51, %v1555_v51  ;;  %v1564_v2 = vmul.f32 %v1556_v4, %v1556_v4  ;;  %v1565_v50 = vmul.f32 %v1557_v26, %v1557_v26  ;;  %v1566_v60 = vmul.f32 %v1558_v19, %v1558_v19 }
 0x483   :  { %v1567_v46 = vadd.f32 %v1560_v63, %v1559_v1  ;;  %v1585_v25 = vmul.f32 %v1584_v9, %v1551_v38  ;;  %v1586_v57 = vmul.f32 %v1584_v9, %v1552_v33  ;;  %v1587_v42 = vmul.f32 %v1584_v9, %v1553_v27 }
 0x484   :  { %v1588_v14 = vmul.f32 %v1584_v9, %v1554_v5  ;;  %v1592_v47 = vmul.f32 %v1584_v9, %v1558_v19  ;;  %v1589_v48 = vmul.f32 %v1584_v9, %v1555_v51  ;;  %v1590_v39 = vmul.f32 %v1584_v9, %v1556_v4  ;;  %v1623_v19 = vld [vmem:[%s4018_s8] sm:$0xff] }
 0x485   :  { %v1568_v35 = vadd.f32 %v1567_v46, %v1561_v8  ;;  %v1591_v52 = vmul.f32 %v1584_v9, %v1557_v26  ;;  %v1860_v8 = vld [vmem:[%s4019_s10] ss:$0 sm:$0xff] }
 0x487   :  { %v1569_v49 = vadd.f32 %v1568_v35, %v1562_v22 }
 0x489   :  { %v1570_v36 = vadd.f32 %v1569_v49, %v1563_v40 }
 0x48b   :  { %v1571_v53 = vadd.f32 %v1570_v36, %v1564_v2 }
 0x48d   :  { %v1572_v62 = vadd.f32 %v1571_v53, %v1565_v50 }
 0x48f   :  { %v1573_v34 = vadd.f32 %v1572_v62, %v1566_v60 }
 0x491   :  { %v1574_v37 = vrot.slane %v1573_v34, 4 }
 0x493   :  { %v1575_v6 = vadd.f32 %v1574_v37, %v1573_v34 }
 0x495   :  { %v1576_v20 = vrot.slane %v1575_v6, 2 }
 0x497   :  { %v1577_v54 = vadd.f32 %v1576_v20, %v1575_v6 }
 0x499   :  { %v1578_v58 = vrot.slane %v1577_v54, 1 }
 0x49b   :  { %v1579_v7 = vadd.f32 %v1578_v58, %v1577_v54 }
 0x49d   :  { %v1580_v16 = vmul.f32 0.015625, %v1579_v7 }
 0x49f   :  { %v1593_v10 = vadd.f32 1e-05, %v1580_v16 }
 0x4a1   :  { %2782 = vrsqrt.f32 %v1593_v10 }
 0x4ab   :  { %v2783_v0 = vpop.eup %2782 }
 0x4ac   :  { %v1595_v15 = vmul.f32 %v2783_v0, %v1585_v25  ;;  %v1596_v21 = vmul.f32 %v2783_v0, %v1586_v57  ;;  %v1597_v55 = vmul.f32 %v2783_v0, %v1587_v42  ;;  %v1598_v43 = vmul.f32 %v2783_v0, %v1588_v14 }
 0x4ad   :  { %v1599_v56 = vmul.f32 %v2783_v0, %v1589_v48  ;;  %v1600_v32 = vmul.f32 %v2783_v0, %v1590_v39  ;;  %v1601_v45 = vmul.f32 %v2783_v0, %v1591_v52  ;;  %v1602_v13 = vmul.f32 %v2783_v0, %v1592_v47 }
 0x4ae   :  { %v1607_v44 = vadd.f32 %v1606_v23, %v1595_v15  ;;  %v1608_v11 = vadd.f32 %v1606_v23, %v1596_v21  ;;  %v1609_v17 = vadd.f32 %v1606_v23, %v1597_v55  ;;  %v1610_v41 = vadd.f32 %v1606_v23, %v1598_v43 }
 0x4af   :  { %v1611_v61 = vadd.f32 %v1606_v23, %v1599_v56  ;;  %v1612_v59 = vadd.f32 %v1606_v23, %v1600_v32  ;;  %v1613_v24 = vadd.f32 %v1606_v23, %v1601_v45  ;;  %v1614_v3 = vadd.f32 %v1606_v23, %v1602_v13 }
 0x4b0   :  { %v1615_v12 = vmax.f32 %v1607_v44, 0.0  ;;  %v1616_v28 = vmax.f32 %v1608_v11, 0.0  ;;  %v1617_v31 = vmax.f32 %v1609_v17, 0.0  ;;  %v1618_v30 = vmax.f32 %v1610_v41, 0.0 }
 0x4b1   :  { %v1619_v29 = vmax.f32 %v1611_v61, 0.0  ;;  %v1620_v38 = vmax.f32 %v1612_v59, 0.0  ;;  %v1621_v33 = vmax.f32 %v1613_v24, 0.0  ;;  %v1622_v27 = vmax.f32 %v1614_v3, 0.0 }
 0x4b2   :  { %v2734_v5 = vpack.c.bf16 %v1616_v28, %v1615_v12  ;;  %v2737_v51 = vpack.c.bf16 %v1618_v30, %v1617_v31 }
 0x4b3   :  { %v2740_v4 = vpack.c.bf16 %v1620_v38, %v1619_v29  ;;  %v2743_v26 = vpack.c.bf16 %v1622_v27, %v1621_v33 }
 0x4b4   :  { %2735 = vmatpush3.bf16.msra.mxu1 %v2734_v5 }
 0x4b5   :  { %2736 = vmatprep.subr.bf16.mxu1 %v2800_v18 }
 0x4b8   :  { %2738 = vmatpush3.bf16.msra.mxu1 %v2737_v51 }
 0x4b9   :  { %2739 = vmatprep.subr.bf16.mxu1 %v2800_v18 }
 0x4bc   :  { %2741 = vmatpush3.bf16.msra.mxu1 %v2740_v4 }
 0x4bd   :  { %2742 = vmatprep.subr.bf16.mxu1 %v2800_v18 }
 0x4c0   :  { %2744 = vmatpush3.bf16.msra.mxu1 %v2743_v26 }
 0x4c3   :  { %2472 = vmatmul.mubr.msk.f32.vlgmr.msra.gmra.mrb[80].mxu1 %vm159_vm0, %v1623_v19 }
 0x596   :  { %v1693_v1 = vpop.f32.mrb[80].mxu1 }
 0x597   :  { %v2473_v63 = vpop.f32.mrb[81].mxu1  ;;  %2507 = vmatmul.mubr.f32.vlgmr.msra.gmra.mrb[64].mxu0 %v1693_v1 }
 0x66a   :  { %v1786_v46 = vpop.f32.mrb[64].mxu0 }
 0x66b   :  { %v1787_v22 = vadd.f32 %v1860_v8, %v1786_v46  ;;  %v2508_v35 = vpop.f32.mrb[65].mxu0 }
 0x66d   :  { %1790 = vst [vmem:[%s4020_s11] sm:$0xff] %v1787_v22 }

</bundles_post_ra>
